<compile_context>
chip_gen: v5e
topology: v5e:2x2
jax: 0.10.0
libtpu: 0.0.40
codegen_flags: <defaults>
</compile_context>

<pallas_src>
import numpy as np
import jax
import jax.numpy as jnp
from jax.experimental import pallas as pl
from jax.experimental.pallas import tpu as pltpu

EMBED_DIM = 64
MLP_HIDDEN = 64
MAX_LV = 1
BLOCK_B = 8                       # states per grid step (BLOCK_B * N fills the MXU M dim)
COMPUTE_DTYPE = jnp.bfloat16      # MXU operand dtype; accumulation stays f32


def _qnet_node_kernel(pick_ref, tgt_ref,                       # SMEM scalar-prefetch (B_pad,)
                      node_lin_ref, b_pick_ref, wc_ref, bc_ref,
                      w1a_ref, w1b_ref, b1_ref, wout_ref, bout_ref,
                      adj_ref, out_ref):
    bt, n, _ = adj_ref.shape
    d = node_lin_ref.shape[1]
    h_dim = w1a_ref.shape[1]
    cd = wc_ref.dtype
    g = pl.program_id(0)

    # ---- picked / target one-hot masks built from scalar indices (no one-hot DMA) ----
    node_iota = jax.lax.broadcasted_iota(jnp.int32, (n, 1), 0)          # (N, 1)
    pick_rows, tgt_rows = [], []
    for bi in range(bt):
        p = pick_ref[g * bt + bi]            # -1 means "picked is None"
        t = tgt_ref[g * bt + bi]
        pick_rows.append((node_iota == p).astype(jnp.float32)[None])    # (1, N, 1)
        tgt_rows.append((node_iota == t).astype(jnp.float32)[None])
    pick_mask = jnp.concatenate(pick_rows, axis=0)                      # (BT, N, 1)
    tgt_mask = jnp.concatenate(tgt_rows, axis=0)                        # (BT, N, 1)

    # ---- node embedding (node_lin precomputed in wrapper, batch-invariant) ----
    node_lin = node_lin_ref[...]                                        # (N, D) f32
    b_pick = b_pick_ref[...][None, :, :]                                # (1, 1, D) f32
    input_message = node_lin[None, :, :] + pick_mask * b_pick           # (BT, N, D) f32
    h = jnp.maximum(input_message, 0.0)

    # ---- message passing ----
    adj = adj_ref[...]                                                  # (BT, N, N) bf16
    bc = bc_ref[...][None, :, :]                                        # (1, 1, D) f32
    for _ in range(MAX_LV):
        n2npool = jnp.einsum('bij,bjd->bid', adj, h.astype(cd),
                             preferred_element_type=jnp.float32)        # (BT, N, D) f32
        node_linear = jnp.dot(n2npool.reshape(bt * n, d).astype(cd), wc_ref[...],
                              preferred_element_type=jnp.float32).reshape(bt, n, d)
        h = jnp.maximum(node_linear + bc + input_message, 0.0)

    # ---- readouts ----
    target_embed = jnp.sum(tgt_mask * h, axis=1)                        # (BT, D) f32
    graph_embed = jnp.mean(h, axis=1)                                   # (BT, D) f32

    # concat([h, graph_embed.repeat]) @ W1 == h @ W1a + graph_embed @ W1b
    hid = jnp.dot(h.reshape(bt * n, d).astype(cd), w1a_ref[...],
                  preferred_element_type=jnp.float32).reshape(bt, n, h_dim)
    g_hid = jnp.dot(graph_embed.astype(cd), w1b_ref[...],
                    preferred_element_type=jnp.float32) + b1_ref[...]   # (BT, H) per-state
    hid = jnp.maximum(hid + g_hid[:, None, :], 0.0)                     # (BT, N, H)

    raw = jnp.dot(hid.reshape(bt * n, h_dim).astype(cd), wout_ref[...],
                  preferred_element_type=jnp.float32).reshape(bt, n, d)
    raw = raw + bout_ref[...][None, :, :]                               # (BT, N, D)

    # bilin_q: row-wise dot with the target embedding -> lane-dense (BT, N) output
    out_ref[...] = jnp.sum(raw * target_embed[:, None, :], axis=-1)


def qnet_node_forward(params, node_features, adj, picked_idx, target_idx,
                      *, block_b=BLOCK_B):
    N, _ = node_features.shape
    B = adj.shape[0]
    D, H = EMBED_DIM, MLP_HIDDEN
    cd = COMPUTE_DTYPE

    # Hoisted batch-invariant projection (computed once by XLA, not B times in-kernel).
    node_lin = (node_features.astype(jnp.float32) @ params["w_n2l"]
                + params["b_n2l"]).astype(jnp.float32)                  # (N, D)

    bt = block_b
    b_pad = pl.cdiv(B, bt) * bt
    pad = b_pad - B
    adj_p = jnp.pad(adj.astype(cd), ((0, pad), (0, 0), (0, 0)))
    pick_p = jnp.pad(jnp.asarray(picked_idx, jnp.int32), (0, pad), constant_values=-1)
    tgt_p = jnp.pad(jnp.asarray(target_idx, jnp.int32), (0, pad), constant_values=0)

    def shared(shape):
        return pl.BlockSpec(shape, lambda g, pick, tgt, _s=shape: (0,) * len(_s))

    in_specs = [
        shared((N, D)),                                          # node_lin (precomputed)
        shared((1, D)),                                          # bias_picked
        shared((D, D)),                                          # conv weight^T (bf16)
        shared((1, D)),                                          # conv bias
        shared((D, H)),                                          # linear_1 weight^T, node half
        shared((D, H)),                                          # linear_1 weight^T, graph half
        shared((1, H)),                                          # linear_1 bias
        shared((H, D)),                                          # linear_out weight^T
        shared((1, D)),                                          # linear_out bias
        pl.BlockSpec((bt, N, N), lambda g, pick, tgt: (g, 0, 0)),  # adj (BT states / step)
    ]
    out_spec = pl.BlockSpec((bt, N), lambda g, pick, tgt: (g, 0))

    q = pl.pallas_call(
        _qnet_node_kernel,
        out_shape=jax.ShapeDtypeStruct((b_pad, N), jnp.float32),
        grid_spec=pltpu.PrefetchScalarGridSpec(
            num_scalar_prefetch=2,
            grid=(b_pad // bt,),
            in_specs=in_specs,
            out_specs=out_spec,
        ),
        compiler_params=pltpu.CompilerParams(dimension_semantics=("parallel",)),
    )(pick_p, tgt_p,
      node_lin, params["b_picked"],
      params["wc"].astype(cd), params["bc"],
      params["w1a"].astype(cd), params["w1b"].astype(cd), params["b1"],
      params["wout"].astype(cd), params["bout"],
      adj_p)

    return q[:B].reshape(B, N, 1)


# ---------------- parameter init (glorot_uniform, matching QNetNode.__init__) ----------------
def _uniform(key, shape, limit):
    return jax.random.uniform(key, shape, jnp.float32, -limit, limit)


def init_qnet_params(key, num_node_feats):
    F, D, H = num_node_feats, EMBED_DIM, MLP_HIDDEN
    ks = jax.random.split(key, 8)
    params = {
        "w_n2l":    _uniform(ks[0], (F, D), np.sqrt(6.0 / (F + D))),
        "b_n2l":    _uniform(ks[1], (1, D), np.sqrt(6.0 / (2 * D))),
        "b_picked": _uniform(ks[2], (1, D), np.sqrt(6.0 / (1 + D))),
        "wc":       _uniform(ks[3], (D, D), np.sqrt(6.0 / (D + D))),
        "bc":       jnp.zeros((1, D), jnp.float32),
        "b1":       jnp.zeros((1, H), jnp.float32),
        "bout":     jnp.zeros((1, D), jnp.float32),
    }
    w1 = _uniform(ks[4], (2 * D, H), np.sqrt(6.0 / (H + 2 * D)))
    params["w1a"] = w1[:D]
    params["w1b"] = w1[D:]
    params["wout"] = _uniform(ks[5], (H, D), np.sqrt(6.0 / (D + H)))
    return params


def init_nstep_params(key, num_steps, num_node_feats):
    return [init_qnet_params(jax.random.fold_in(key, t), num_node_feats)
            for t in range(num_steps)]


def nstep_qnet_node_forward(params_list, time_t, node_features, adj,
                            picked_idx, target_idx):
    assert 0 <= time_t < len(params_list)
    return qnet_node_forward(params_list[time_t], node_features, adj,
                             picked_idx, target_idx)


# ---------------- pure-JAX reference (mirrors the kernel's bf16/f32 numerics) ----------------
def reference_forward(w, node_features, adj, picked_idx, target_idx):
    N = node_features.shape[0]
    cd = COMPUTE_DTYPE
    node_lin = node_features @ w["w_n2l"] + w["b_n2l"]                  # f32 (N, D)
    wc = w["wc"].astype(cd)
    w1a = w["w1a"].astype(cd)
    w1b = w["w1b"].astype(cd)
    wout = w["wout"].astype(cd)
    node_ids = jnp.arange(N)
    outs = []
    for b in range(adj.shape[0]):
        a = adj[b].astype(cd)
        pick_mask = (node_ids == picked_idx[b]).astype(jnp.float32)[:, None]  # (N,1)
        tgt_mask = (node_ids == target_idx[b]).astype(jnp.float32)[:, None]
        input_message = node_lin + pick_mask * w["b_picked"]
        h = jnp.maximum(input_message, 0.0)
        for _ in range(MAX_LV):
            n2npool = jnp.dot(a, h.astype(cd), preferred_element_type=jnp.float32)
            node_linear = jnp.dot(n2npool.astype(cd), wc,
                                  preferred_element_type=jnp.float32) + w["bc"]
            h = jnp.maximum(node_linear + input_message, 0.0)
        target_embed = jnp.sum(tgt_mask * h, axis=0, keepdims=True)     # (1, D)
        graph_embed = jnp.mean(h, axis=0, keepdims=True)                # (1, D)
        hid = (jnp.dot(h.astype(cd), w1a, preferred_element_type=jnp.float32)
               + jnp.dot(graph_embed.astype(cd), w1b, preferred_element_type=jnp.float32)
               + w["b1"])
        hid = jnp.maximum(hid, 0.0)
        raw = jnp.dot(hid.astype(cd), wout, preferred_element_type=jnp.float32) + w["bout"]
        outs.append(jnp.sum(raw * target_embed, axis=1, keepdims=True))  # (N, 1)
    return jnp.stack(outs, axis=0)


if __name__ == "__main__":
    key = jax.random.PRNGKey(0)
    N = 16          # total_nodes
    F = 32          # node feature dim
    B = 2           # batch of states
    NUM_STEPS = 3
    TIME_T = 1

    k_feat, k_adj, k_params = jax.random.split(key, 3)

    # node features (dense)
    node_features = jax.random.uniform(k_feat, (N, F), jnp.float32)

    # per-state dense adjacency, symmetrized + row-normalized ("mean_field")
    a = (jax.random.uniform(k_adj, (B, N, N)) > 0.7).astype(jnp.float32)
    a = jnp.maximum(a, jnp.transpose(a, (0, 2, 1)))
    deg = jnp.clip(jnp.sum(a, axis=2, keepdims=True), 1.0, None)
    adj = a / deg

    # states: (target_node, graph, picked_node); picked=None encoded as index -1
    target_idx = jnp.array([0, 5], jnp.int32)
    picked_idx = jnp.array([3, -1], jnp.int32)

    params_list = init_nstep_params(k_params, NUM_STEPS, F)

    q = nstep_qnet_node_forward(params_list, TIME_T, node_features, adj,
                                picked_idx, target_idx)
    q = jax.block_until_ready(q)

    q_ref = reference_forward(params_list[TIME_T], node_features, adj,
                              picked_idx, target_idx)
    np.testing.assert_allclose(np.asarray(q), np.asarray(q_ref), rtol=1e-2, atol=1e-2)

    print("KERNEL_OK")
</pallas_src>

<mosaic_0001>
module attributes {stable_mosaic.version = 11 : i64} {
  func.func @_qnet_node_kernel(%arg0: i32, %arg1: memref<8xi32, #tpu.memory_space<smem>>, %arg2: memref<8xi32, #tpu.memory_space<smem>>, %arg3: memref<16x64xf32, #tpu.memory_space<vmem>>, %arg4: memref<1x64xf32, #tpu.memory_space<vmem>>, %arg5: memref<64x64xbf16, #tpu.memory_space<vmem>>, %arg6: memref<1x64xf32, #tpu.memory_space<vmem>>, %arg7: memref<64x64xbf16, #tpu.memory_space<vmem>>, %arg8: memref<64x64xbf16, #tpu.memory_space<vmem>>, %arg9: memref<1x64xf32, #tpu.memory_space<vmem>>, %arg10: memref<64x64xbf16, #tpu.memory_space<vmem>>, %arg11: memref<1x64xf32, #tpu.memory_space<vmem>>, %arg12: memref<8x16x16xbf16, #tpu.memory_space<vmem>>, %arg13: memref<8x16xf32, #tpu.memory_space<vmem>>) attributes {dimension_semantics = [#tpu.dimension_semantics<parallel>], iteration_bounds = array<i64: 1>, scalar_prefetch = 2 : i64, scratch_operands = 0 : i64, tpu.core_type = #tpu.core_type<tc>, window_params = [{pipeline_mode = #tpu.pipeline_mode<synchronous>, transform_indices = @transform_0, window_bounds = array<i64: 16, 64>}, {pipeline_mode = #tpu.pipeline_mode<synchronous>, transform_indices = @transform_1, window_bounds = array<i64: 1, 64>}, {pipeline_mode = #tpu.pipeline_mode<synchronous>, transform_indices = @transform_2, window_bounds = array<i64: 64, 64>}, {pipeline_mode = #tpu.pipeline_mode<synchronous>, transform_indices = @transform_3, window_bounds = array<i64: 1, 64>}, {pipeline_mode = #tpu.pipeline_mode<synchronous>, transform_indices = @transform_4, window_bounds = array<i64: 64, 64>}, {pipeline_mode = #tpu.pipeline_mode<synchronous>, transform_indices = @transform_5, window_bounds = array<i64: 64, 64>}, {pipeline_mode = #tpu.pipeline_mode<synchronous>, transform_indices = @transform_6, window_bounds = array<i64: 1, 64>}, {pipeline_mode = #tpu.pipeline_mode<synchronous>, transform_indices = @transform_7, window_bounds = array<i64: 64, 64>}, {pipeline_mode = #tpu.pipeline_mode<synchronous>, transform_indices = @transform_8, window_bounds = array<i64: 1, 64>}, {transform_indices = @transform_9, window_bounds = array<i64: 8, 16, 16>}, {transform_indices = @transform_10, window_bounds = array<i64: 8, 16>}]} {
    %0 = tpu.iota {dimensions = array<i32: 0>} : vector<16x1xi32>
    %c8_i32 = arith.constant 8 : i32
    %1 = arith.muli %arg0, %c8_i32 : i32
    %c0_i32 = arith.constant 0 : i32
    %2 = arith.addi %1, %c0_i32 : i32
    %3 = arith.index_cast %2 : i32 to index
    %4 = memref.load %arg1[%3] : memref<8xi32, #tpu.memory_space<smem>>
    %c8_i32_0 = arith.constant 8 : i32
    %5 = arith.muli %arg0, %c8_i32_0 : i32
    %c0_i32_1 = arith.constant 0 : i32
    %6 = arith.addi %5, %c0_i32_1 : i32
    %7 = arith.index_cast %6 : i32 to index
    %8 = memref.load %arg2[%7] : memref<8xi32, #tpu.memory_space<smem>>
    %9 = vector.broadcast %4 : i32 to vector<16x1xi32>
    %10 = arith.cmpi eq, %0, %9 : vector<16x1xi32>
    %11 = arith.extui %10 : vector<16x1xi1> to vector<16x1xi32>
    %12 = arith.sitofp %11 : vector<16x1xi32> to vector<16x1xf32>
    %13 = vector.shape_cast %12 : vector<16x1xf32> to vector<1x16x1xf32>
    %14 = vector.broadcast %8 : i32 to vector<16x1xi32>
    %15 = arith.cmpi eq, %0, %14 : vector<16x1xi32>
    %16 = arith.extui %15 : vector<16x1xi1> to vector<16x1xi32>
    %17 = arith.sitofp %16 : vector<16x1xi32> to vector<16x1xf32>
    %18 = vector.shape_cast %17 : vector<16x1xf32> to vector<1x16x1xf32>
    %c8_i32_2 = arith.constant 8 : i32
    %19 = arith.muli %arg0, %c8_i32_2 : i32
    %c1_i32 = arith.constant 1 : i32
    %20 = arith.addi %19, %c1_i32 : i32
    %21 = arith.index_cast %20 : i32 to index
    %22 = memref.load %arg1[%21] : memref<8xi32, #tpu.memory_space<smem>>
    %c8_i32_3 = arith.constant 8 : i32
    %23 = arith.muli %arg0, %c8_i32_3 : i32
    %c1_i32_4 = arith.constant 1 : i32
    %24 = arith.addi %23, %c1_i32_4 : i32
    %25 = arith.index_cast %24 : i32 to index
    %26 = memref.load %arg2[%25] : memref<8xi32, #tpu.memory_space<smem>>
    %27 = vector.broadcast %22 : i32 to vector<16x1xi32>
    %28 = arith.cmpi eq, %0, %27 : vector<16x1xi32>
    %29 = arith.extui %28 : vector<16x1xi1> to vector<16x1xi32>
    %30 = arith.sitofp %29 : vector<16x1xi32> to vector<16x1xf32>
    %31 = vector.shape_cast %30 : vector<16x1xf32> to vector<1x16x1xf32>
    %32 = vector.broadcast %26 : i32 to vector<16x1xi32>
    %33 = arith.cmpi eq, %0, %32 : vector<16x1xi32>
    %34 = arith.extui %33 : vector<16x1xi1> to vector<16x1xi32>
    %35 = arith.sitofp %34 : vector<16x1xi32> to vector<16x1xf32>
    %36 = vector.shape_cast %35 : vector<16x1xf32> to vector<1x16x1xf32>
    %c8_i32_5 = arith.constant 8 : i32
    %37 = arith.muli %arg0, %c8_i32_5 : i32
    %c2_i32 = arith.constant 2 : i32
    %38 = arith.addi %37, %c2_i32 : i32
    %39 = arith.index_cast %38 : i32 to index
    %40 = memref.load %arg1[%39] : memref<8xi32, #tpu.memory_space<smem>>
    %c8_i32_6 = arith.constant 8 : i32
    %41 = arith.muli %arg0, %c8_i32_6 : i32
    %c2_i32_7 = arith.constant 2 : i32
    %42 = arith.addi %41, %c2_i32_7 : i32
    %43 = arith.index_cast %42 : i32 to index
    %44 = memref.load %arg2[%43] : memref<8xi32, #tpu.memory_space<smem>>
    %45 = vector.broadcast %40 : i32 to vector<16x1xi32>
    %46 = arith.cmpi eq, %0, %45 : vector<16x1xi32>
    %47 = arith.extui %46 : vector<16x1xi1> to vector<16x1xi32>
    %48 = arith.sitofp %47 : vector<16x1xi32> to vector<16x1xf32>
    %49 = vector.shape_cast %48 : vector<16x1xf32> to vector<1x16x1xf32>
    %50 = vector.broadcast %44 : i32 to vector<16x1xi32>
    %51 = arith.cmpi eq, %0, %50 : vector<16x1xi32>
    %52 = arith.extui %51 : vector<16x1xi1> to vector<16x1xi32>
    %53 = arith.sitofp %52 : vector<16x1xi32> to vector<16x1xf32>
    %54 = vector.shape_cast %53 : vector<16x1xf32> to vector<1x16x1xf32>
    %c8_i32_8 = arith.constant 8 : i32
    %55 = arith.muli %arg0, %c8_i32_8 : i32
    %c3_i32 = arith.constant 3 : i32
    %56 = arith.addi %55, %c3_i32 : i32
    %57 = arith.index_cast %56 : i32 to index
    %58 = memref.load %arg1[%57] : memref<8xi32, #tpu.memory_space<smem>>
    %c8_i32_9 = arith.constant 8 : i32
    %59 = arith.muli %arg0, %c8_i32_9 : i32
    %c3_i32_10 = arith.constant 3 : i32
    %60 = arith.addi %59, %c3_i32_10 : i32
    %61 = arith.index_cast %60 : i32 to index
    %62 = memref.load %arg2[%61] : memref<8xi32, #tpu.memory_space<smem>>
    %63 = vector.broadcast %58 : i32 to vector<16x1xi32>
    %64 = arith.cmpi eq, %0, %63 : vector<16x1xi32>
    %65 = arith.extui %64 : vector<16x1xi1> to vector<16x1xi32>
    %66 = arith.sitofp %65 : vector<16x1xi32> to vector<16x1xf32>
    %67 = vector.shape_cast %66 : vector<16x1xf32> to vector<1x16x1xf32>
    %68 = vector.broadcast %62 : i32 to vector<16x1xi32>
    %69 = arith.cmpi eq, %0, %68 : vector<16x1xi32>
    %70 = arith.extui %69 : vector<16x1xi1> to vector<16x1xi32>
    %71 = arith.sitofp %70 : vector<16x1xi32> to vector<16x1xf32>
    %72 = vector.shape_cast %71 : vector<16x1xf32> to vector<1x16x1xf32>
    %c8_i32_11 = arith.constant 8 : i32
    %73 = arith.muli %arg0, %c8_i32_11 : i32
    %c4_i32 = arith.constant 4 : i32
    %74 = arith.addi %73, %c4_i32 : i32
    %75 = arith.index_cast %74 : i32 to index
    %76 = memref.load %arg1[%75] : memref<8xi32, #tpu.memory_space<smem>>
    %c8_i32_12 = arith.constant 8 : i32
    %77 = arith.muli %arg0, %c8_i32_12 : i32
    %c4_i32_13 = arith.constant 4 : i32
    %78 = arith.addi %77, %c4_i32_13 : i32
    %79 = arith.index_cast %78 : i32 to index
    %80 = memref.load %arg2[%79] : memref<8xi32, #tpu.memory_space<smem>>
    %81 = vector.broadcast %76 : i32 to vector<16x1xi32>
    %82 = arith.cmpi eq, %0, %81 : vector<16x1xi32>
    %83 = arith.extui %82 : vector<16x1xi1> to vector<16x1xi32>
    %84 = arith.sitofp %83 : vector<16x1xi32> to vector<16x1xf32>
    %85 = vector.shape_cast %84 : vector<16x1xf32> to vector<1x16x1xf32>
    %86 = vector.broadcast %80 : i32 to vector<16x1xi32>
    %87 = arith.cmpi eq, %0, %86 : vector<16x1xi32>
    %88 = arith.extui %87 : vector<16x1xi1> to vector<16x1xi32>
    %89 = arith.sitofp %88 : vector<16x1xi32> to vector<16x1xf32>
    %90 = vector.shape_cast %89 : vector<16x1xf32> to vector<1x16x1xf32>
    %c8_i32_14 = arith.constant 8 : i32
    %91 = arith.muli %arg0, %c8_i32_14 : i32
    %c5_i32 = arith.constant 5 : i32
    %92 = arith.addi %91, %c5_i32 : i32
    %93 = arith.index_cast %92 : i32 to index
    %94 = memref.load %arg1[%93] : memref<8xi32, #tpu.memory_space<smem>>
    %c8_i32_15 = arith.constant 8 : i32
    %95 = arith.muli %arg0, %c8_i32_15 : i32
    %c5_i32_16 = arith.constant 5 : i32
    %96 = arith.addi %95, %c5_i32_16 : i32
    %97 = arith.index_cast %96 : i32 to index
    %98 = memref.load %arg2[%97] : memref<8xi32, #tpu.memory_space<smem>>
    %99 = vector.broadcast %94 : i32 to vector<16x1xi32>
    %100 = arith.cmpi eq, %0, %99 : vector<16x1xi32>
    %101 = arith.extui %100 : vector<16x1xi1> to vector<16x1xi32>
    %102 = arith.sitofp %101 : vector<16x1xi32> to vector<16x1xf32>
    %103 = vector.shape_cast %102 : vector<16x1xf32> to vector<1x16x1xf32>
    %104 = vector.broadcast %98 : i32 to vector<16x1xi32>
    %105 = arith.cmpi eq, %0, %104 : vector<16x1xi32>
    %106 = arith.extui %105 : vector<16x1xi1> to vector<16x1xi32>
    %107 = arith.sitofp %106 : vector<16x1xi32> to vector<16x1xf32>
    %108 = vector.shape_cast %107 : vector<16x1xf32> to vector<1x16x1xf32>
    %c8_i32_17 = arith.constant 8 : i32
    %109 = arith.muli %arg0, %c8_i32_17 : i32
    %c6_i32 = arith.constant 6 : i32
    %110 = arith.addi %109, %c6_i32 : i32
    %111 = arith.index_cast %110 : i32 to index
    %112 = memref.load %arg1[%111] : memref<8xi32, #tpu.memory_space<smem>>
    %c8_i32_18 = arith.constant 8 : i32
    %113 = arith.muli %arg0, %c8_i32_18 : i32
    %c6_i32_19 = arith.constant 6 : i32
    %114 = arith.addi %113, %c6_i32_19 : i32
    %115 = arith.index_cast %114 : i32 to index
    %116 = memref.load %arg2[%115] : memref<8xi32, #tpu.memory_space<smem>>
    %117 = vector.broadcast %112 : i32 to vector<16x1xi32>
    %118 = arith.cmpi eq, %0, %117 : vector<16x1xi32>
    %119 = arith.extui %118 : vector<16x1xi1> to vector<16x1xi32>
    %120 = arith.sitofp %119 : vector<16x1xi32> to vector<16x1xf32>
    %121 = vector.shape_cast %120 : vector<16x1xf32> to vector<1x16x1xf32>
    %122 = vector.broadcast %116 : i32 to vector<16x1xi32>
    %123 = arith.cmpi eq, %0, %122 : vector<16x1xi32>
    %124 = arith.extui %123 : vector<16x1xi1> to vector<16x1xi32>
    %125 = arith.sitofp %124 : vector<16x1xi32> to vector<16x1xf32>
    %126 = vector.shape_cast %125 : vector<16x1xf32> to vector<1x16x1xf32>
    %c8_i32_20 = arith.constant 8 : i32
    %127 = arith.muli %arg0, %c8_i32_20 : i32
    %c7_i32 = arith.constant 7 : i32
    %128 = arith.addi %127, %c7_i32 : i32
    %129 = arith.index_cast %128 : i32 to index
    %130 = memref.load %arg1[%129] : memref<8xi32, #tpu.memory_space<smem>>
    %c8_i32_21 = arith.constant 8 : i32
    %131 = arith.muli %arg0, %c8_i32_21 : i32
    %c7_i32_22 = arith.constant 7 : i32
    %132 = arith.addi %131, %c7_i32_22 : i32
    %133 = arith.index_cast %132 : i32 to index
    %134 = memref.load %arg2[%133] : memref<8xi32, #tpu.memory_space<smem>>
    %135 = vector.broadcast %130 : i32 to vector<16x1xi32>
    %136 = arith.cmpi eq, %0, %135 : vector<16x1xi32>
    %137 = arith.extui %136 : vector<16x1xi1> to vector<16x1xi32>
    %138 = arith.sitofp %137 : vector<16x1xi32> to vector<16x1xf32>
    %139 = vector.shape_cast %138 : vector<16x1xf32> to vector<1x16x1xf32>
    %140 = vector.broadcast %134 : i32 to vector<16x1xi32>
    %141 = arith.cmpi eq, %0, %140 : vector<16x1xi32>
    %142 = arith.extui %141 : vector<16x1xi1> to vector<16x1xi32>
    %143 = arith.sitofp %142 : vector<16x1xi32> to vector<16x1xf32>
    %144 = vector.shape_cast %143 : vector<16x1xf32> to vector<1x16x1xf32>
    %145 = tpu.concatenate %13, %31, %49, %67, %85, %103, %121, %139 in 0 : vector<1x16x1xf32>, vector<1x16x1xf32>, vector<1x16x1xf32>, vector<1x16x1xf32>, vector<1x16x1xf32>, vector<1x16x1xf32>, vector<1x16x1xf32>, vector<1x16x1xf32> -> vector<8x16x1xf32>
    %146 = tpu.concatenate %18, %36, %54, %72, %90, %108, %126, %144 in 0 : vector<1x16x1xf32>, vector<1x16x1xf32>, vector<1x16x1xf32>, vector<1x16x1xf32>, vector<1x16x1xf32>, vector<1x16x1xf32>, vector<1x16x1xf32>, vector<1x16x1xf32> -> vector<8x16x1xf32>
    %c0 = arith.constant 0 : index
    %c0_23 = arith.constant 0 : index
    %147 = vector.load %arg3[%c0, %c0_23] : memref<16x64xf32, #tpu.memory_space<vmem>>, vector<16x64xf32>
    %c0_24 = arith.constant 0 : index
    %c0_25 = arith.constant 0 : index
    %148 = vector.load %arg4[%c0_24, %c0_25] : memref<1x64xf32, #tpu.memory_space<vmem>>, vector<1x64xf32>
    %149 = vector.shape_cast %148 : vector<1x64xf32> to vector<1x1x64xf32>
    %150 = vector.shape_cast %147 : vector<16x64xf32> to vector<1x16x64xf32>
    %151 = vector.broadcast %145 : vector<8x16x1xf32> to vector<8x16x64xf32>
    %152 = vector.broadcast %149 : vector<1x1x64xf32> to vector<8x16x64xf32>
    %153 = arith.mulf %151, %152 : vector<8x16x64xf32>
    %154 = vector.broadcast %150 : vector<1x16x64xf32> to vector<8x16x64xf32>
    %155 = arith.addf %154, %153 : vector<8x16x64xf32>
    %cst = arith.constant 0.000000e+00 : f32
    %156 = vector.broadcast %cst : f32 to vector<8x16x64xf32>
    %157 = arith.maximumf %155, %156 : vector<8x16x64xf32>
    %c0_26 = arith.constant 0 : index
    %c0_27 = arith.constant 0 : index
    %c0_28 = arith.constant 0 : index
    %158 = vector.load %arg12[%c0_26, %c0_27, %c0_28] : memref<8x16x16xbf16, #tpu.memory_space<vmem>>, vector<8x16x16xbf16>
    %c0_29 = arith.constant 0 : index
    %c0_30 = arith.constant 0 : index
    %159 = vector.load %arg6[%c0_29, %c0_30] : memref<1x64xf32, #tpu.memory_space<vmem>>, vector<1x64xf32>
    %160 = vector.shape_cast %159 : vector<1x64xf32> to vector<1x1x64xf32>
    %161 = arith.truncf %157 : vector<8x16x64xf32> to vector<8x16x64xbf16>
    "tpu.trace_start"() <{level = 10 : i32, message = "bij,bjd->bid"}> : () -> ()
    %cst_31 = arith.constant dense<0.000000e+00> : vector<8x16x64xf32>
    %162 = tpu.matmul %158, %161, %cst_31 {dimension_numbers = #tpu.dot_dimension_numbers<[2], [1], [1], [2], [0, 0, 0, 1, 1, 2], [0], [0]>} : vector<8x16x16xbf16>, vector<8x16x64xbf16>, vector<8x16x64xf32> -> vector<8x16x64xf32>
    "tpu.trace_stop"() : () -> ()
    %163 = vector.shape_cast %162 : vector<8x16x64xf32> to vector<128x64xf32>
    %164 = arith.truncf %163 : vector<128x64xf32> to vector<128x64xbf16>
    %c0_32 = arith.constant 0 : index
    %c0_33 = arith.constant 0 : index
    %165 = vector.load %arg5[%c0_32, %c0_33] : memref<64x64xbf16, #tpu.memory_space<vmem>>, vector<64x64xbf16>
    %cst_34 = arith.constant dense<0.000000e+00> : vector<128x64xf32>
    %166 = tpu.matmul %164, %165, %cst_34 {dimension_numbers = #tpu.dot_dimension_numbers<[1], [0], [0], [1], [0, 0, 1, 1], [], []>} : vector<128x64xbf16>, vector<64x64xbf16>, vector<128x64xf32> -> vector<128x64xf32>
    %167 = vector.shape_cast %166 : vector<128x64xf32> to vector<8x16x64xf32>
    %168 = vector.broadcast %160 : vector<1x1x64xf32> to vector<8x16x64xf32>
    %169 = arith.addf %167, %168 : vector<8x16x64xf32>
    %170 = arith.addf %169, %155 : vector<8x16x64xf32>
    %cst_35 = arith.constant 0.000000e+00 : f32
    %171 = vector.broadcast %cst_35 : f32 to vector<8x16x64xf32>
    %172 = arith.maximumf %170, %171 : vector<8x16x64xf32>
    %173 = vector.broadcast %146 : vector<8x16x1xf32> to vector<8x16x64xf32>
    %174 = arith.mulf %173, %172 : vector<8x16x64xf32>
    %cst_36 = arith.constant dense<0.000000e+00> : vector<8x64xf32>
    %175 = vector.multi_reduction <add>, %174, %cst_36 [1] : vector<8x16x64xf32> to vector<8x64xf32>
    %cst_37 = arith.constant dense<0.000000e+00> : vector<8x64xf32>
    %176 = vector.multi_reduction <add>, %172, %cst_37 [1] : vector<8x16x64xf32> to vector<8x64xf32>
    %cst_38 = arith.constant 1.600000e+01 : f32
    %177 = vector.broadcast %cst_38 : f32 to vector<8x64xf32>
    %178 = arith.divf %176, %177 : vector<8x64xf32>
    %179 = vector.shape_cast %172 : vector<8x16x64xf32> to vector<128x64xf32>
    %180 = arith.truncf %179 : vector<128x64xf32> to vector<128x64xbf16>
    %c0_39 = arith.constant 0 : index
    %c0_40 = arith.constant 0 : index
    %181 = vector.load %arg7[%c0_39, %c0_40] : memref<64x64xbf16, #tpu.memory_space<vmem>>, vector<64x64xbf16>
    %cst_41 = arith.constant dense<0.000000e+00> : vector<128x64xf32>
    %182 = tpu.matmul %180, %181, %cst_41 {dimension_numbers = #tpu.dot_dimension_numbers<[1], [0], [0], [1], [0, 0, 1, 1], [], []>} : vector<128x64xbf16>, vector<64x64xbf16>, vector<128x64xf32> -> vector<128x64xf32>
    %183 = vector.shape_cast %182 : vector<128x64xf32> to vector<8x16x64xf32>
    %184 = arith.truncf %178 : vector<8x64xf32> to vector<8x64xbf16>
    %c0_42 = arith.constant 0 : index
    %c0_43 = arith.constant 0 : index
    %185 = vector.load %arg8[%c0_42, %c0_43] : memref<64x64xbf16, #tpu.memory_space<vmem>>, vector<64x64xbf16>
    %cst_44 = arith.constant dense<0.000000e+00> : vector<8x64xf32>
    %186 = tpu.matmul %184, %185, %cst_44 {dimension_numbers = #tpu.dot_dimension_numbers<[1], [0], [0], [1], [0, 0, 1, 1], [], []>} : vector<8x64xbf16>, vector<64x64xbf16>, vector<8x64xf32> -> vector<8x64xf32>
    %c0_45 = arith.constant 0 : index
    %c0_46 = arith.constant 0 : index
    %187 = vector.load %arg9[%c0_45, %c0_46] : memref<1x64xf32, #tpu.memory_space<vmem>>, vector<1x64xf32>
    %188 = vector.broadcast %187 : vector<1x64xf32> to vector<8x64xf32>
    %189 = arith.addf %186, %188 : vector<8x64xf32>
    %190 = vector.shape_cast %189 : vector<8x64xf32> to vector<8x1x64xf32>
    %191 = vector.broadcast %190 : vector<8x1x64xf32> to vector<8x16x64xf32>
    %192 = arith.addf %183, %191 : vector<8x16x64xf32>
    %cst_47 = arith.constant 0.000000e+00 : f32
    %193 = vector.broadcast %cst_47 : f32 to vector<8x16x64xf32>
    %194 = arith.maximumf %192, %193 : vector<8x16x64xf32>
    %195 = vector.shape_cast %194 : vector<8x16x64xf32> to vector<128x64xf32>
    %196 = arith.truncf %195 : vector<128x64xf32> to vector<128x64xbf16>
    %c0_48 = arith.constant 0 : index
    %c0_49 = arith.constant 0 : index
    %197 = vector.load %arg10[%c0_48, %c0_49] : memref<64x64xbf16, #tpu.memory_space<vmem>>, vector<64x64xbf16>
    %cst_50 = arith.constant dense<0.000000e+00> : vector<128x64xf32>
    %198 = tpu.matmul %196, %197, %cst_50 {dimension_numbers = #tpu.dot_dimension_numbers<[1], [0], [0], [1], [0, 0, 1, 1], [], []>} : vector<128x64xbf16>, vector<64x64xbf16>, vector<128x64xf32> -> vector<128x64xf32>
    %199 = vector.shape_cast %198 : vector<128x64xf32> to vector<8x16x64xf32>
    %c0_51 = arith.constant 0 : index
    %c0_52 = arith.constant 0 : index
    %200 = vector.load %arg11[%c0_51, %c0_52] : memref<1x64xf32, #tpu.memory_space<vmem>>, vector<1x64xf32>
    %201 = vector.shape_cast %200 : vector<1x64xf32> to vector<1x1x64xf32>
    %202 = vector.broadcast %201 : vector<1x1x64xf32> to vector<8x16x64xf32>
    %203 = arith.addf %199, %202 : vector<8x16x64xf32>
    %204 = vector.shape_cast %175 : vector<8x64xf32> to vector<8x1x64xf32>
    %205 = vector.broadcast %204 : vector<8x1x64xf32> to vector<8x16x64xf32>
    %206 = arith.mulf %203, %205 : vector<8x16x64xf32>
    %cst_53 = arith.constant dense<0.000000e+00> : vector<8x16xf32>
    %207 = vector.multi_reduction <add>, %206, %cst_53 [2] : vector<8x16x64xf32> to vector<8x16xf32>
    %c0_54 = arith.constant 0 : index
    %c0_55 = arith.constant 0 : index
    %208 = vector.load %arg13[%c0_54, %c0_55] : memref<8x16xf32, #tpu.memory_space<vmem>>, vector<8x16xf32>
    tpu.vector_store %arg13[%c0_54, %c0_55], %207 {strides = array<i32>} : memref<8x16xf32, #tpu.memory_space<vmem>>, vector<8x16xf32>,
    return
  }
  func.func @transform_0(%arg0: i32, %arg1: memref<8xi32, #tpu.memory_space<smem>>, %arg2: memref<8xi32, #tpu.memory_space<smem>>) -> (i32, i32) {
    %c0_i32 = arith.constant 0 : i32
    %c0_i32_0 = arith.constant 0 : i32
    %c0_i32_1 = arith.constant 0 : i32
    return %c0_i32, %c0_i32_0 : i32, i32
  }
  func.func @transform_1(%arg0: i32, %arg1: memref<8xi32, #tpu.memory_space<smem>>, %arg2: memref<8xi32, #tpu.memory_space<smem>>) -> (i32, i32) {
    %c0_i32 = arith.constant 0 : i32
    %c0_i32_0 = arith.constant 0 : i32
    %c0_i32_1 = arith.constant 0 : i32
    return %c0_i32, %c0_i32_0 : i32, i32
  }
  func.func @transform_2(%arg0: i32, %arg1: memref<8xi32, #tpu.memory_space<smem>>, %arg2: memref<8xi32, #tpu.memory_space<smem>>) -> (i32, i32) {
    %c0_i32 = arith.constant 0 : i32
    %c0_i32_0 = arith.constant 0 : i32
    %c0_i32_1 = arith.constant 0 : i32
    return %c0_i32, %c0_i32_0 : i32, i32
  }
  func.func @transform_3(%arg0: i32, %arg1: memref<8xi32, #tpu.memory_space<smem>>, %arg2: memref<8xi32, #tpu.memory_space<smem>>) -> (i32, i32) {
    %c0_i32 = arith.constant 0 : i32
    %c0_i32_0 = arith.constant 0 : i32
    %c0_i32_1 = arith.constant 0 : i32
    return %c0_i32, %c0_i32_0 : i32, i32
  }
  func.func @transform_4(%arg0: i32, %arg1: memref<8xi32, #tpu.memory_space<smem>>, %arg2: memref<8xi32, #tpu.memory_space<smem>>) -> (i32, i32) {
    %c0_i32 = arith.constant 0 : i32
    %c0_i32_0 = arith.constant 0 : i32
    %c0_i32_1 = arith.constant 0 : i32
    return %c0_i32, %c0_i32_0 : i32, i32
  }
  func.func @transform_5(%arg0: i32, %arg1: memref<8xi32, #tpu.memory_space<smem>>, %arg2: memref<8xi32, #tpu.memory_space<smem>>) -> (i32, i32) {
    %c0_i32 = arith.constant 0 : i32
    %c0_i32_0 = arith.constant 0 : i32
    %c0_i32_1 = arith.constant 0 : i32
    return %c0_i32, %c0_i32_0 : i32, i32
  }
  func.func @transform_6(%arg0: i32, %arg1: memref<8xi32, #tpu.memory_space<smem>>, %arg2: memref<8xi32, #tpu.memory_space<smem>>) -> (i32, i32) {
    %c0_i32 = arith.constant 0 : i32
    %c0_i32_0 = arith.constant 0 : i32
    %c0_i32_1 = arith.constant 0 : i32
    return %c0_i32, %c0_i32_0 : i32, i32
  }
  func.func @transform_7(%arg0: i32, %arg1: memref<8xi32, #tpu.memory_space<smem>>, %arg2: memref<8xi32, #tpu.memory_space<smem>>) -> (i32, i32) {
    %c0_i32 = arith.constant 0 : i32
    %c0_i32_0 = arith.constant 0 : i32
    %c0_i32_1 = arith.constant 0 : i32
    return %c0_i32, %c0_i32_0 : i32, i32
  }
  func.func @transform_8(%arg0: i32, %arg1: memref<8xi32, #tpu.memory_space<smem>>, %arg2: memref<8xi32, #tpu.memory_space<smem>>) -> (i32, i32) {
    %c0_i32 = arith.constant 0 : i32
    %c0_i32_0 = arith.constant 0 : i32
    %c0_i32_1 = arith.constant 0 : i32
    return %c0_i32, %c0_i32_0 : i32, i32
  }
  func.func @transform_9(%arg0: i32, %arg1: memref<8xi32, #tpu.memory_space<smem>>, %arg2: memref<8xi32, #tpu.memory_space<smem>>) -> (i32, i32, i32) {
    %c0_i32 = arith.constant 0 : i32
    %c0_i32_0 = arith.constant 0 : i32
    %c0_i32_1 = arith.constant 0 : i32
    return %arg0, %c0_i32, %c0_i32_0 : i32, i32, i32
  }
  func.func @transform_10(%arg0: i32, %arg1: memref<8xi32, #tpu.memory_space<smem>>, %arg2: memref<8xi32, #tpu.memory_space<smem>>) -> (i32, i32) {
    %c0_i32 = arith.constant 0 : i32
    %c0_i32_0 = arith.constant 0 : i32
    return %arg0, %c0_i32 : i32, i32
  }
}

</mosaic_0001>

<bundles_post_ra>
// kernel: tpu_custom_call.1
= control target key start
LH: loop header
LB: loop body
LE: loop exit
PB: predicated region body
PF: predicated region fallthrough
CT: control target
= control target key end

     0   :  { %s2135_s27 = smov [#allocation3]   ;;  %s2136_s28 = smov [#allocation4]   ;;  %s2659_s0 = inlined_call_operand.hbm [shape: s32[8], index: 0, kind: input, shape index: {}]   ;;  %s2660_s2 = inlined_call_operand.hbm [shape: f32[16,64], index: 2, kind: input, shape index: {}]   ;;  %s2661_s3 = inlined_call_operand.vmem [shape: f32[1,64], index: 3, kind: input, shape index: {}]   ;;  %s2662_s4 = inlined_call_operand.hbm [shape: bf16[64,64], index: 4, kind: input, shape index: {}]   ;;  %s2663_s5 = inlined_call_operand.vmem [shape: f32[1,64], index: 5, kind: input, shape index: {}]   ;;  %s2664_s6 = inlined_call_operand.hbm [shape: bf16[64,64], index: 6, kind: input, shape index: {}]   ;;  %s2665_s7 = inlined_call_operand.hbm [shape: bf16[64,64], index: 7, kind: input, shape index: {}]   ;;  %s2666_s8 = inlined_call_operand.vmem [shape: f32[1,64], index: 8, kind: input, shape index: {}]   ;;  %s2667_s9 = inlined_call_operand.hbm [shape: bf16[64,64], index: 9, kind: input, shape index: {}]   ;;  %s2668_s10 = inlined_call_operand.vmem [shape: f32[1,64], index: 10, kind: input, shape index: {}]   ;;  %s2669_s11 = inlined_call_operand.hbm [shape: bf16[8,16,16], index: 11, kind: input, shape index: {}]   ;;  %s2670_s12 = inlined_call_operand.hbm [shape: f32[8,16], index: 12, kind: output, shape index: {}]   ;;  %s2671_s1 = inlined_call_operand.hbm [shape: s32[8], index: 1, kind: input, shape index: {}]  }
   0x1   :  { %s18_s23 = sshll.u32 %s2659_s0, 4  ;;  %s23_s26 = sshll.u32 %s2671_s1, 4  ;;  %s19_s23 = int_to_ptr.hbm [resolvable:$true] %s18_s23  ;;  %s24_s26 = int_to_ptr.hbm [resolvable:$true] %s23_s26 }
   0x2   :  { %21 = dma.hbm_to_smem %s19_s23, 16, %s2135_s27, [#allocation2] }
   0x3   :  { %26 = dma.hbm_to_smem %s24_s26, 16, %s2136_s28, [#allocation2] }
   0x4   :  { %2123 = dma.done.wait [#allocation2], 32 }
   0x5   :  { %2124 = vsyncadd [#allocation2], 4294967264 }
   0x6   :  { %29 = sfence }
   0x7   :  { %30 = vsyncpa [#allocation6], 0 }
   0x8   :  { %31 = vsyncpa [#allocation9], 0 }
   0x9   :  { %32 = vsyncpa [#allocation12], 0 }
   0xa   :  { %33 = vsyncpa [#allocation15], 0  ;;  %s54_s0 = sshll.u32 %s2662_s4, 4  ;;  %s55_s0 = int_to_ptr.hbm [resolvable:$true] %s54_s0 }
   0xb   :  { %34 = vsyncpa [#allocation7], 0  ;;  %s2137_s1 = smov [#allocation8]   ;;  %s82_s16 = sshll.u32 %s2665_s7, 4  ;;  %s83_s16 = int_to_ptr.hbm [resolvable:$true] %s82_s16 }
   0xc   :  { %s56_s13 = sshll.u32 %s2137_s1, 4  ;;  %s2138_s17 = smov 64   ;;  %s57_s13 = int_to_ptr.vmem [resolvable:$true] %s56_s13 }
   0xd   :  { %s2139_s18 = smov 4   ;;  %s2140_s19 = smov [#allocation11]  }
   0xe   :  { %62 = dma.hbm_to_vmem [thread:$0]  %s55_s0, 512, %s57_s13, [#allocation9], %s2138_s17, %s2138_s17, %s2139_s18  }
   0xf   :  { %s84_s20 = sshll.u32 %s2140_s19, 4  ;;  %s39_s22 = sshll.u32 %s2660_s2, 4  ;;  %s85_s20 = int_to_ptr.vmem [resolvable:$true] %s84_s20  ;;  %s40_s22 = int_to_ptr.hbm [resolvable:$true] %s39_s22 }
  0x10   :  { %90 = dma.hbm_to_vmem [thread:$0]  %s83_s16, 512, %s85_s20, [#allocation12], %s2138_s17, %s2138_s17, %s2139_s18  }
  0x11   :  { %s2141_s7 = smov [#allocation5]   ;;  %s69_s26 = sshll.u32 %s2664_s6, 4  ;;  %s70_s26 = int_to_ptr.hbm [resolvable:$true] %s69_s26 }
  0x12   :  { %s41_s23 = sshll.u32 %s2141_s7, 4  ;;  %s2142_s27 = smov 128   ;;  %s42_s23 = int_to_ptr.vmem [resolvable:$true] %s41_s23 }
  0x13   :  { %s2143_s28 = smov 8   ;;  %s2144_s29 = smov [#allocation10]  }
  0x14   :  { %47 = dma.hbm_to_vmem [thread:$0]  %s40_s22, 256, %s42_s23, [#allocation6], %s2142_s27, %s2142_s27, %s2143_s28  }
  0x15   :  { %s71_s30 = sshll.u32 %s2144_s29, 4  ;;  %s97_s1 = sshll.u32 %s2667_s9, 4  ;;  %s72_s30 = int_to_ptr.vmem [resolvable:$true] %s71_s30  ;;  %s98_s1 = int_to_ptr.hbm [resolvable:$true] %s97_s1 }
  0x16   :  { %77 = dma.hbm_to_vmem [thread:$0]  %s70_s26, 512, %s72_s30, [#allocation9], %s2138_s17, %s2138_s17, %s2139_s18  }
  0x17   :  { %s112_s6 = sshll.u32 %s2669_s11, 4  ;;  %s2145_s15 = smov [#allocation13]   ;;  %s113_s6 = int_to_ptr.hbm [resolvable:$true] %s112_s6 }
  0x18   :  { %s99_s16 = sshll.u32 %s2145_s15, 4  ;;  %s2146_s19 = smov [#allocation14]   ;;  %s100_s16 = int_to_ptr.vmem [resolvable:$true] %s99_s16 }
  0x19   :  { %105 = dma.hbm_to_vmem [thread:$0]  %s98_s1, 512, %s100_s16, [#allocation12], %s2138_s17, %s2138_s17, %s2139_s18  }
  0x1a   :  { %s114_s9 = sshll.u32 %s2146_s19, 4  ;;  %s115_s9 = int_to_ptr.vmem [resolvable:$true] %s114_s9 }
  0x1b   :  { %120 = dma.hbm_to_vmem [thread:$0]  %s113_s6, 1024, %s115_s9, [#allocation15], %s2138_s17, %s2138_s17, %s2139_s18  }
  0x1c   :  { %2125 = dma.done.wait [#allocation6], 256  }
  0x1d   :  { %2126 = vsyncadd [#allocation6], 4294967040 }
  0x1e   :  { %2127 = dma.done.wait [#allocation9], 1024  }
  0x1f   :  { %2128 = vsyncadd [#allocation9], 4294966272 }
  0x20   :  { %2129 = dma.done.wait [#allocation12], 1024  }
  0x21   :  { %2130 = vsyncadd [#allocation12], 4294966272 }
  0x22   :  { %2131 = dma.done.wait [#allocation15], 1024  }
  0x23   :  { %2132 = vsyncadd [#allocation15], 4294966272  ;;  %v146_v0 = vlaneseq  ;;  %v2147_v1 = vmov 0   ;;  %s1637_s11 = sld [smem:[#allocation3 + $0x2]]  ;;  %v2148_v6 = vmov 0.0   ;;  %s1614_s19 = sshll.u32 %s2670_s12, 4  ;;  %s1615_s19 = int_to_ptr.hbm [resolvable:$true] %s1614_s19 }
  0x24   :  { %1853 = vset.pattern.permute.xlu1 %v2147_v1  ;;  %1842 = vset.pattern.permute.xlu0 %v2147_v1  ;;  %s150_s20 = sld [smem:[#allocation3]] }
  0x25   :  { %v2256_v2 = vshrl.u32 %v146_v0, 7  ;;  %1864 = vset.pattern.permute.xlu2 %v2147_v1  ;;  %s1643_s21 = sld [smem:[#allocation3 + $0x3]] }
  0x26   :  { %s1631_s17 = sld [smem:[#allocation3 + $0x1]] }
  0x27   :  { %v2259_v3 = vadd.s32 8, %v2256_v2  ;;  %s2261_s18 = sld [smem:[#allocation3 + $0x7]] }
  0x28   :  { %s2263_s4 = sld [smem:[#allocation3 + $0x6]] }
  0x29   :  { %v186_v4 = vstv %s1637_s11  ;;  %s2282_s22 = sld [smem:[#allocation4 + $0x2]] }
  0x2a   :  { %vm187_vm0 = vcmp.eq.s32.totalorder %v2256_v2, %v186_v4  ;;  %vm188_vm1 = vcmp.eq.s32.totalorder %v2259_v3, %v186_v4  ;;  %v152_v5 = vstv %s150_s20  ;;  %s1649_s7 = sld [smem:[#allocation3 + $0x4]] }
  0x2b   :  { %v1639_v7 = vsel %vm187_vm0, 1.0, %v2148_v6  ;;  %v1640_v8 = vsel %vm188_vm1, 1.0, %v2148_v6  ;;  %vm153_vm2 = vcmp.eq.s32.totalorder %v2256_v2, %v152_v5  ;;  %vm154_vm3 = vcmp.eq.s32.totalorder %v2259_v3, %v152_v5  ;;  %s2285_s23 = sld [smem:[#allocation4 + $0x1]] }
  0x2c   :  { %v1854_v9 = vpack.i.bf16 %v1640_v8, %v1639_v7  ;;  %v1627_v10 = vsel %vm153_vm2, 1.0, %v2148_v6  ;;  %v1628_v11 = vsel %vm154_vm3, 1.0, %v2148_v6  ;;  %v203_v12 = vstv %s1643_s21  ;;  %s1655_s24 = sld [smem:[#allocation3 + $0x5]] }
  0x2d   :  { %v1843_v13 = vpack.i.bf16 %v1628_v11, %v1627_v10  ;;  %vm204_vm4 = vcmp.eq.s32.totalorder %v2256_v2, %v203_v12  ;;  %vm205_vm5 = vcmp.eq.s32.totalorder %v2259_v3, %v203_v12  ;;  %v169_v14 = vstv %s1631_s17  ;;  %s2296_s25 = sld [smem:[#allocation4 + $0x5]] }
  0x2e   :  { %1855 = vperm.xlu1 %1853, %v1854_v9   ;;  %vm170_vm6 = vcmp.eq.s32.totalorder %v2256_v2, %v169_v14  ;;  %vm171_vm7 = vcmp.eq.s32.totalorder %v2259_v3, %v169_v14  ;;  %v1645_v15 = vsel %vm204_vm4, 1.0, %v2148_v6  ;;  %v1646_v16 = vsel %vm205_vm5, 1.0, %v2148_v6  ;;  %s2298_s26 = sld [smem:[#allocation4]]  ;;  %v2349_v9 = vld [vmem:[%s2661_s3] ss:$0 sm:$0xff] }
  0x2f   :  { %1844 = vperm.xlu0 %1842, %v1843_v13   ;;  %v1633_v17 = vsel %vm170_vm6, 1.0, %v2148_v6  ;;  %v1634_v18 = vsel %vm171_vm7, 1.0, %v2148_v6  ;;  %v271_v19 = vstv %s2261_s18  ;;  %v254_v20 = vstv %s2263_s4  ;;  %s2301_s27 = sld [smem:[#allocation4 + $0x4]] }
  0x30   :  { %v1859_v21 = vpack.i.bf16 %v1646_v16, %v1645_v15  ;;  %v1848_v22 = vpack.i.bf16 %v1634_v18, %v1633_v17  ;;  %vm272_vm8 = vcmp.eq.s32.totalorder %v2256_v2, %v271_v19  ;;  %vm273_vm9 = vcmp.eq.s32.totalorder %v2259_v3, %v271_v19  ;;  %s1644_s28 = sld [smem:[#allocation4 + $0x3]]  ;;  %v2353_v15 = vld [vmem:[#allocation5 + $0x8] sm:$0xff] }
  0x31   :  { %vm255_vm10 = vcmp.eq.s32.totalorder %v2256_v2, %v254_v20  ;;  %vm256_vm11 = vcmp.eq.s32.totalorder %v2259_v3, %v254_v20  ;;  %v1669_v23 = vsel %vm272_vm8, 1.0, %v2148_v6  ;;  %v1670_v24 = vsel %vm273_vm9, 1.0, %v2148_v6  ;;  %s1668_s29 = sld [smem:[#allocation4 + $0x7]] }
  0x32   :  { %v1663_v25 = vsel %vm255_vm10, 1.0, %v2148_v6  ;;  %v1664_v26 = vsel %vm256_vm11, 1.0, %v2148_v6  ;;  %v193_v27 = vstv %s2282_s22  ;;  %v1880_v28 = vpack.i.bf16 %v1670_v24, %v1669_v23  ;;  %s1662_s30 = sld [smem:[#allocation4 + $0x6]] }
  0x33   :  { %v220_v29 = vstv %s1649_s7  ;;  %v1875_v30 = vpack.i.bf16 %v1664_v26, %v1663_v25  ;;  %v176_v31 = vstv %s2285_s23  ;;  %vm194_vm14 = vcmp.eq.s32.totalorder %v2256_v2, %v193_v27 }
  0x34   :  { %vm221_vm12 = vcmp.eq.s32.totalorder %v2256_v2, %v220_v29  ;;  %vm222_vm13 = vcmp.eq.s32.totalorder %v2259_v3, %v220_v29  ;;  %v237_v34 = vstv %s1655_s24  ;;  %vm195_vm15 = vcmp.eq.s32.totalorder %v2259_v3, %v193_v27 }
  0x35   :  { %v1651_v32 = vsel %vm221_vm12, 1.0, %v2148_v6  ;;  %v1652_v33 = vsel %vm222_vm13, 1.0, %v2148_v6  ;;  %vm238_vm0 = vcmp.eq.s32.totalorder %v2256_v2, %v237_v34  ;;  %vm239_vm1 = vcmp.eq.s32.totalorder %v2259_v3, %v237_v34 }
  0x36   :  { %1860 = vperm.xlu1 %1853, %v1859_v21   ;;  %v1865_v35 = vpack.i.bf16 %v1652_v33, %v1651_v32  ;;  %vm177_vm2 = vcmp.eq.s32.totalorder %v2256_v2, %v176_v31  ;;  %vm178_vm3 = vcmp.eq.s32.totalorder %v2259_v3, %v176_v31  ;;  %v1641_v36 = vsel %vm194_vm14, 1.0, %v2148_v6 }
  0x37   :  { %1849 = vperm.xlu0 %1842, %v1848_v22   ;;  %v1642_v37 = vsel %vm195_vm15, 1.0, %v2148_v6  ;;  %v1657_v38 = vsel %vm238_vm0, 1.0, %v2148_v6  ;;  %v1658_v39 = vsel %vm239_vm1, 1.0, %v2148_v6  ;;  %v1635_v40 = vsel %vm177_vm2, 1.0, %v2148_v6 }
  0x38   :  { %1866 = vperm.xlu2 %1864, %v1865_v35   ;;  %v1636_v41 = vsel %vm178_vm3, 1.0, %v2148_v6  ;;  %v244_v42 = vstv %s2296_s25  ;;  %v159_v43 = vstv %s2298_s26  ;;  %v1895_v44 = vpack.i.bf16 %v1642_v37, %v1641_v36 }
  0x39   :  { %v227_v45 = vstv %s2301_s27  ;;  %v1870_v46 = vpack.i.bf16 %v1658_v39, %v1657_v38  ;;  %v1890_v47 = vpack.i.bf16 %v1636_v41, %v1635_v40  ;;  %vm245_vm4 = vcmp.eq.s32.totalorder %v2256_v2, %v244_v42 }
  0x3a   :  { %vm246_vm5 = vcmp.eq.s32.totalorder %v2259_v3, %v244_v42  ;;  %vm160_vm6 = vcmp.eq.s32.totalorder %v2256_v2, %v159_v43  ;;  %vm161_vm7 = vcmp.eq.s32.totalorder %v2259_v3, %v159_v43  ;;  %vm228_vm8 = vcmp.eq.s32.totalorder %v2256_v2, %v227_v45 }
  0x3b   :  { %vm229_vm9 = vcmp.eq.s32.totalorder %v2259_v3, %v227_v45  ;;  %v1659_v48 = vsel %vm245_vm4, 1.0, %v2148_v6  ;;  %v1660_v49 = vsel %vm246_vm5, 1.0, %v2148_v6  ;;  %v1629_v50 = vsel %vm160_vm6, 1.0, %v2148_v6 }
  0x3c   :  { %v1630_v51 = vsel %vm161_vm7, 1.0, %v2148_v6  ;;  %v1653_v52 = vsel %vm228_vm8, 1.0, %v2148_v6  ;;  %v1654_v53 = vsel %vm229_vm9, 1.0, %v2148_v6  ;;  %v210_v54 = vstv %s1644_s28 }
  0x3d   :  { %v1910_v55 = vpack.i.bf16 %v1660_v49, %v1659_v48  ;;  %v278_v56 = vstv %s1668_s29  ;;  %v1885_v57 = vpack.i.bf16 %v1630_v51, %v1629_v50  ;;  %v1905_v58 = vpack.i.bf16 %v1654_v53, %v1653_v52  ;;  %v1802_v48 = vld [vmem:[#allocation14] sm:$0xff] }
  0x3e   :  { %1881 = vperm.xlu1 %1853, %v1880_v28   ;;  %vm211_vm10 = vcmp.eq.s32.totalorder %v2256_v2, %v210_v54  ;;  %vm212_vm11 = vcmp.eq.s32.totalorder %v2259_v3, %v210_v54  ;;  %vm279_vm12 = vcmp.eq.s32.totalorder %v2256_v2, %v278_v56  ;;  %vm280_vm13 = vcmp.eq.s32.totalorder %v2259_v3, %v278_v56 }
  0x3f   :  { %1876 = vperm.xlu0 %1842, %v1875_v30   ;;  %v1647_v59 = vsel %vm211_vm10, 1.0, %v2148_v6  ;;  %v1648_v60 = vsel %vm212_vm11, 1.0, %v2148_v6  ;;  %v1671_v61 = vsel %vm279_vm12, 1.0, %v2148_v6  ;;  %v1672_v62 = vsel %vm280_vm13, 1.0, %v2148_v6 }
  0x40   :  { %1871 = vperm.xlu2 %1864, %v1870_v46   ;;  %v261_v63 = vstv %s1662_s30  ;;  %v1900_v1 = vpack.i.bf16 %v1648_v60, %v1647_v59  ;;  %v1920_v4 = vpack.i.bf16 %v1672_v62, %v1671_v61  ;;  %vm463_vm0 = vcmask 130048  }
  0x41   :  { %vm262_vm14 = vcmp.eq.s32.totalorder %v2256_v2, %v261_v63  ;;  %vm263_vm15 = vcmp.eq.s32.totalorder %v2259_v3, %v261_v63  ;;  %v2351_v3 = vld [vmem:[#allocation5] sm:$0xff]  ;;  %vm717_vm1 = vcmask 523264   ;;  %vm1246_vm3 = vcmask 1041409  }
  0x42   :  { %v1665_v5 = vsel %vm262_vm14, 1.0, %v2148_v6  ;;  %v1666_v7 = vsel %vm263_vm15, 1.0, %v2148_v6  ;;  %vm1248_vm4 = vcmask 1042434   ;;  %vm1250_vm5 = vcmask 1043459  }
  0x43   :  { %v1915_v8 = vpack.i.bf16 %v1666_v7, %v1665_v5  ;;  %vm1252_vm6 = vcmask 1044484   ;;  %vm1254_vm7 = vcmask 1045509   ;;  %vm1256_vm8 = vcmask 1046534  }
  0x44   :  { %vm1258_vm9 = vcmask 1047559   ;;  %vm1575_vm10 = vcmask 130112  }
  0x46   :  { %1896 = vperm.xlu1 %1853, %v1895_v44  }
  0x47   :  { %1891 = vperm.xlu0 %1842, %v1890_v47  }
  0x48   :  { %1886 = vperm.xlu2 %1864, %v1885_v57  }
  0x4e   :  { %1911 = vperm.xlu1 %1853, %v1910_v55  }
  0x4f   :  { %1906 = vperm.xlu0 %1842, %v1905_v58  }
  0x50   :  { %1901 = vperm.xlu2 %1864, %v1900_v1  }
  0x57   :  { %1921 = vperm.xlu0 %1842, %v1920_v4  }
  0x58   :  { %1916 = vperm.xlu2 %1864, %v1915_v8  }
  0xa0   :  { %v1856_v10 = vpop.permute.xlu1 %1855 }
  0xa1   :  { %v1858_v11 = vunpack.i.h.bf16 %v1856_v10  ;;  %v1857_v12 = vunpack.i.l.bf16 %v1856_v10  ;;  %v1845_v13 = vpop.permute.xlu0 %1844 }
  0xa2   :  { %v1847_v2 = vunpack.i.h.bf16 %v1845_v13  ;;  %v1846_v14 = vunpack.i.l.bf16 %v1845_v13 }
  0xa3   :  { %v376_v16 = vmul.f32 %v2349_v9, %v1858_v11  ;;  %v375_v6 = vmul.f32 %v2349_v9, %v1857_v12 }
  0xa4   :  { %v372_v17 = vmul.f32 %v2349_v9, %v1847_v2  ;;  %v371_v18 = vmul.f32 %v2349_v9, %v1846_v14  ;;  %v1867_v14 = vpop.permute.xlu2 %1866 }
  0xa5   :  { %v2360_v19 = vadd.f32 %v376_v16, %v2353_v15  ;;  %v2363_v20 = vadd.f32 %v375_v6, %v2351_v3  ;;  %v1869_v6 = vunpack.i.h.bf16 %v1867_v14 }
  0xa6   :  { %v2366_v21 = vadd.f32 %v371_v18, %v2351_v3  ;;  %v2369_v22 = vadd.f32 %v372_v17, %v2353_v15 }
  0xa7   :  { %v408_v26 = vmax.f32 %v2360_v19, 0.0  ;;  %v407_v27 = vmax.f32 %v2363_v20, 0.0 }
  0xa8   :  { %v1861_v23 = vpop.permute.xlu1 %1860  ;;  %v403_v24 = vmax.f32 %v2366_v21, 0.0  ;;  %v404_v25 = vmax.f32 %v2369_v22, 0.0 }
  0xa9   :  { %v1863_v28 = vunpack.i.h.bf16 %v1861_v23  ;;  %v1862_v29 = vunpack.i.l.bf16 %v1861_v23  ;;  %v1850_v30 = vpop.permute.xlu0 %1849  ;;  %v441_v41 = vpack.c.bf16 %v408_v26, %v408_v26  ;;  %v440_v42 = vpack.c.bf16 %v407_v27, %v407_v27 }
  0xaa   :  { %v1852_v31 = vunpack.i.h.bf16 %v1850_v30  ;;  %v1851_v32 = vunpack.i.l.bf16 %v1850_v30  ;;  %v436_v33 = vpack.c.bf16 %v403_v24, %v403_v24  ;;  %v437_v34 = vpack.c.bf16 %v404_v25, %v404_v25 }
  0xab   :  { %v378_v35 = vmul.f32 %v2349_v9, %v1863_v28  ;;  %v377_v36 = vmul.f32 %v2349_v9, %v1862_v29  ;;  %v517_v52 = vunpack.c.l.b16 %v441_v41  ;;  %v516_v53 = vunpack.c.l.b16 %v440_v42 }
  0xac   :  { %v374_v37 = vmul.f32 %v2349_v9, %v1852_v31  ;;  %v373_v38 = vmul.f32 %v2349_v9, %v1851_v32  ;;  %v459_v39 = vunpack.c.l.b16 %v436_v33  ;;  %v460_v40 = vunpack.c.l.b16 %v437_v34  ;;  %v1803_v34 = vld [vmem:[#allocation14 + $0x8] sm:$0xff]  ;;  %v1872_v41 = vpop.permute.xlu2 %1871 }
  0xad   :  { %v2386_v46 = vadd.f32 %v378_v35, %v2353_v15  ;;  %v2389_v47 = vadd.f32 %v377_v36, %v2351_v3  ;;  %v518_v10 = vpack.c.b16 %v517_v52, %v516_v53  ;;  %v1868_v24 = vunpack.i.l.bf16 %v1867_v14  ;;  %v1809_v14 = vld [vmem:[#allocation14 + $0x38] sm:$0xff] }
  0xae   :  { %v2380_v43 = vadd.f32 %v374_v37, %v2353_v15  ;;  %v2383_v44 = vadd.f32 %v373_v38, %v2351_v3  ;;  %v461_v45 = vpack.c.b16 %v460_v40, %v459_v39  ;;  %v380_v31 = vmul.f32 %v2349_v9, %v1869_v6  ;;  %v1813_v6 = vld [vmem:[#allocation8 + $0x18] sm:$0xff] }
  0xaf   :  { %v410_v61 = vmax.f32 %v2386_v46, 0.0  ;;  %v409_v62 = vmax.f32 %v2389_v47, 0.0  ;;  %v379_v32 = vmul.f32 %v2349_v9, %v1868_v24  ;;  %746 = vmatpush.bf16.msra.mxu0 %v1813_v6  ;;  %v1811_v24 = vld [vmem:[#allocation8 + $0x8] sm:$0xff]  ;;  %v2149_v6 = vmov 16.0  }
  0xb0   :  { %474 = vmatpush.bf16.msra.mxu2 %v461_v45  ;;  %v1882_v49 = vpop.permute.xlu1 %1881  ;;  %v405_v50 = vmax.f32 %v2383_v44, 0.0  ;;  %v406_v51 = vmax.f32 %v2380_v43, 0.0  ;;  %v2417_v36 = vadd.f32 %v380_v31, %v2353_v15  ;;  %1929 = vrcp.f32 %v2149_v6 }
  0xb1   :  { %v1884_v54 = vunpack.i.h.bf16 %v1882_v49  ;;  %v1883_v55 = vunpack.i.l.bf16 %v1882_v49  ;;  %v1877_v56 = vpop.permute.xlu0 %1876  ;;  %v443_v18 = vpack.c.bf16 %v410_v61, %v410_v61  ;;  %v442_v23 = vpack.c.bf16 %v409_v62, %v409_v62 }
  0xb2   :  { %v1879_v57 = vunpack.i.h.bf16 %v1877_v56  ;;  %v1878_v58 = vunpack.i.l.bf16 %v1877_v56  ;;  %v438_v59 = vpack.c.bf16 %v405_v50, %v405_v50  ;;  %v439_v60 = vpack.c.bf16 %v406_v51, %v406_v51 }
  0xb3   :  { %v386_v63 = vmul.f32 %v2349_v9, %v1884_v54  ;;  %v385_v1 = vmul.f32 %v2349_v9, %v1883_v55  ;;  %1677 = vmatmul.msk.bf16.vlgmr.msra.gmra.mxu2 %vm463_vm0, %v1802_v48  ;;  %v545_v29 = vunpack.c.l.b16 %v443_v18  ;;  %v544_v30 = vunpack.c.l.b16 %v442_v23  ;;  %v1804_v54 = vld [vmem:[#allocation14 + $0x10] sm:$0xff] }
  0xb4   :  { %v384_v4 = vmul.f32 %v2349_v9, %v1879_v57  ;;  %v383_v5 = vmul.f32 %v2349_v9, %v1878_v58  ;;  %v488_v7 = vunpack.c.l.b16 %v438_v59  ;;  %v489_v8 = vunpack.c.l.b16 %v439_v60  ;;  %v1808_v18 = vld [vmem:[#allocation14 + $0x30] sm:$0xff] }
  0xb5   :  { %v2401_v11 = vadd.f32 %v385_v1, %v2351_v3  ;;  %v2410_v16 = vadd.f32 %v386_v63, %v2353_v15  ;;  %v2420_v37 = vadd.f32 %v379_v32, %v2351_v3  ;;  %v546_v38 = vpack.c.b16 %v545_v29, %v544_v30  ;;  %v1812_v23 = vld [vmem:[#allocation8 + $0x10] sm:$0xff] }
  0xb6   :  { %v2404_v12 = vadd.f32 %v384_v4, %v2353_v15  ;;  %v2407_v13 = vadd.f32 %v383_v5, %v2351_v3  ;;  %v490_v2 = vpack.c.b16 %v489_v8, %v488_v7  ;;  %v412_v39 = vmax.f32 %v2417_v36, 0.0  ;;  %747 = vmatpush.bf16.msra.mxu0 %v1812_v23 }
  0xb7   :  { %v417_v17 = vmax.f32 %v2401_v11, 0.0  ;;  %v418_v25 = vmax.f32 %v2410_v16, 0.0  ;;  %v411_v40 = vmax.f32 %v2420_v37, 0.0  ;;  %v1874_v48 = vunpack.i.h.bf16 %v1872_v41 }
  0xb8   :  { %502 = vmatpush.bf16.msrb.mxu2 %v490_v2  ;;  %v445_v42 = vpack.c.bf16 %v412_v39, %v412_v39  ;;  %v1873_v49 = vunpack.i.l.bf16 %v1872_v41 }
  0xb9   :  { %v450_v26 = vpack.c.bf16 %v417_v17, %v417_v17  ;;  %v451_v27 = vpack.c.bf16 %v418_v25, %v418_v25  ;;  %v444_v45 = vpack.c.bf16 %v411_v40, %v411_v40  ;;  %v382_v52 = vmul.f32 %v2349_v9, %v1874_v48  ;;  %v1807_v17 = vld [vmem:[#allocation14 + $0x28] sm:$0xff]  ;;  %v1810_v25 = vld [vmem:[#allocation8] sm:$0xff] }
  0xba   :  { %v573_v50 = vunpack.c.l.b16 %v445_v42  ;;  %v381_v53 = vmul.f32 %v2349_v9, %v1873_v49  ;;  %v1805_v9 = vld [vmem:[#allocation14 + $0x18] sm:$0xff]  ;;  %748 = vmatpush.bf16.msra.mxu0 %v1811_v24 }
  0xbb   :  { %v656_v28 = vunpack.c.l.b16 %v450_v26  ;;  %v657_v33 = vunpack.c.l.b16 %v451_v27  ;;  %v572_v51 = vunpack.c.l.b16 %v444_v45  ;;  %v2428_v55 = vadd.f32 %v382_v52, %v2353_v15 }
  0xbc   :  { %530 = vmatpush.bf16.msra.mxu2 %v518_v10  ;;  %v2431_v56 = vadd.f32 %v381_v53, %v2351_v3  ;;  %v416_v3 = vmax.f32 %v2404_v12, 0.0  ;;  %v415_v15 = vmax.f32 %v2407_v13, 0.0  ;;  %v1806_v10 = vld [vmem:[#allocation14 + $0x20] sm:$0xff]  ;;  %v1817_v53 = vld [vmem:[#allocation10 + $0x18] sm:$0xff] }
  0xbd   :  { %v658_v35 = vpack.c.b16 %v657_v33, %v656_v28  ;;  %v574_v57 = vpack.c.b16 %v573_v50, %v572_v51  ;;  %v414_v58 = vmax.f32 %v2428_v55, 0.0  ;;  %1165 = vmatpush.bf16.msra.mxu1 %v1817_v53 }
  0xbe   :  { %v413_v59 = vmax.f32 %v2431_v56, 0.0  ;;  %v449_v4 = vpack.c.bf16 %v416_v3, %v416_v3  ;;  %v448_v5 = vpack.c.bf16 %v415_v15, %v415_v15  ;;  %749 = vmatpush.bf16.msra.mxu0 %v1810_v25 }
  0xbf   :  { %670 = vmatpush.bf16.msra.mxu3 %v658_v35  ;;  %v447_v60 = vpack.c.bf16 %v414_v58, %v414_v58  ;;  %v1815_v58 = vld [vmem:[#allocation10 + $0x8] sm:$0xff] }
  0xc0   :  { %v446_v61 = vpack.c.bf16 %v413_v59, %v413_v59  ;;  %v629_v7 = vunpack.c.l.b16 %v449_v4  ;;  %v628_v8 = vunpack.c.l.b16 %v448_v5  ;;  %v1814_v59 = vld [vmem:[#allocation10] sm:$0xff]  ;;  %v1887_v5 = vpop.permute.xlu2 %1886 }
  0xc1   :  { %v601_v62 = vunpack.c.l.b16 %v447_v60 }
  0xc2   :  { %v600_v63 = vunpack.c.l.b16 %v446_v61  ;;  %v630_v2 = vpack.c.b16 %v629_v7, %v628_v8  ;;  %1712 = vmatmul.msk.bf16.vlgmr.msra.gmra.mxu3 %vm463_vm0, %v1809_v14  ;;  %v1888_v7 = vunpack.i.l.bf16 %v1887_v5 }
  0xc3   :  { %1682 = vmatmul.msk.bf16.vlgmr.msrb.gmra.mxu2 %vm463_vm0, %v1803_v34 }
  0xc4   :  { %558 = vmatpush.bf16.msrb.mxu2 %v546_v38  ;;  %v602_v1 = vpack.c.b16 %v601_v62, %v600_v63  ;;  %v2454_v62 = vld [vmem:[%s2663_s5] ss:$0 sm:$0xff] }
  0xd3   :  { %1687 = vmatmul.msk.bf16.vlgmr.msra.gmra.mxu2 %vm463_vm0, %v1804_v54 }
  0xd4   :  { %586 = vmatpush.bf16.msra.mxu2 %v574_v57  ;;  %v1816_v57 = vld [vmem:[#allocation10 + $0x10] sm:$0xff] }
  0xd5   :  { %1166 = vmatpush.bf16.msra.mxu1 %v1816_v57 }
  0xd9   :  { %1167 = vmatpush.bf16.msra.mxu1 %v1815_v58 }
  0xdd   :  { %1168 = vmatpush.bf16.msra.mxu1 %v1814_v59 }
  0xe3   :  { %1692 = vmatmul.msk.bf16.vlgmr.msrb.gmra.mxu2 %vm463_vm0, %v1805_v9 }
  0xe4   :  { %614 = vmatpush.bf16.msrb.mxu2 %v602_v1 }
  0xf3   :  { %1697 = vmatmul.msk.bf16.vlgmr.msra.gmra.mxu2 %vm463_vm0, %v1806_v10  ;;  %v1889_v10 = vunpack.i.h.bf16 %v1887_v5 }
  0xf4   :  { %642 = vmatpush.bf16.msra.mxu2 %v630_v2 }
 0x103   :  { %1702 = vmatmul.msk.bf16.vlgmr.msrb.gmra.mxu2 %vm463_vm0, %v1807_v17 }
 0x113   :  { %1707 = vmatmul.msk.bf16.vlgmr.msra.gmra.mxu2 %vm463_vm0, %v1808_v18 }
 0x136   :  { %v476_v26 = vpop.f32.mrf.mxu2 }
 0x13e   :  { %v478_v27 = vpop.f32.mrf.mxu2 }
 0x13f   :  { %v677_v28 = vpack.c.bf16 %v478_v27, %v476_v26 }
 0x141   :  { %1729 = vmatmul.msk.bf16.vlgmr.msra.gmra.mxu0 %vm717_vm1, %v677_v28 }
 0x145   :  { %v672_v54 = vpop.f32.mrf.mxu3 }
 0x146   :  { %v504_v29 = vpop.f32.mrf.mxu2 }
 0x14d   :  { %v674_v60 = vpop.f32.mrf.mxu3 }
 0x14e   :  { %v506_v30 = vpop.f32.mrf.mxu2  ;;  %v684_v61 = vpack.c.bf16 %v674_v60, %v672_v54 }
 0x14f   :  { %v678_v31 = vpack.c.bf16 %v506_v30, %v504_v29  ;;  %v1930_v30 = vpop.eup %1929 }
 0x150   :  { %vm1087_vm2 = vweird.f32 %v1930_v30 }
 0x151   :  { %1730 = vmatmul.msk.bf16.gmra.mxu0 %vm717_vm1, %v678_v31 }
 0x156   :  { %v532_v32 = vpop.f32.mrf.mxu2 }
 0x15e   :  { %v534_v33 = vpop.f32.mrf.mxu2 }
 0x15f   :  { %v679_v34 = vpack.c.bf16 %v534_v33, %v532_v32  ;;  %v1083_v33 = vmul.f32 16.0, %v1930_v30 }
 0x161   :  { %1731 = vmatmul.msk.bf16.gmra.mxu0 %vm717_vm1, %v679_v34  ;;  %v1892_v34 = vpop.permute.xlu0 %1891 }
 0x166   :  { %v560_v35 = vpop.f32.mrf.mxu2 }
 0x16e   :  { %v562_v38 = vpop.f32.mrf.mxu2 }
 0x16f   :  { %v680_v39 = vpack.c.bf16 %v562_v38, %v560_v35 }
 0x171   :  { %1732 = vmatmul.msk.bf16.gmra.mxu0 %vm717_vm1, %v680_v39 }
 0x176   :  { %v588_v40 = vpop.f32.mrf.mxu2 }
 0x17e   :  { %v590_v41 = vpop.f32.mrf.mxu2 }
 0x17f   :  { %v681_v42 = vpack.c.bf16 %v590_v41, %v588_v40  ;;  %v1084_v41 = vsub.f32 1.0, %v1083_v33 }
 0x181   :  { %1733 = vmatmul.msk.bf16.gmra.mxu0 %vm717_vm1, %v681_v42  ;;  %v1893_v42 = vunpack.i.l.bf16 %v1892_v34 }
 0x186   :  { %v616_v45 = vpop.f32.mrf.mxu2 }
 0x18e   :  { %v618_v48 = vpop.f32.mrf.mxu2 }
 0x18f   :  { %v682_v49 = vpack.c.bf16 %v618_v48, %v616_v45  ;;  %v1894_v48 = vunpack.i.h.bf16 %v1892_v34 }
 0x191   :  { %1734 = vmatmul.msk.bf16.gmra.mxu0 %vm717_vm1, %v682_v49 }
 0x196   :  { %v644_v50 = vpop.f32.mrf.mxu2 }
 0x19e   :  { %v646_v51 = vpop.f32.mrf.mxu2 }
 0x19f   :  { %v683_v52 = vpack.c.bf16 %v646_v51, %v644_v50 }
 0x1a1   :  { %1735 = vmatmul.msk.bf16.gmra.mxu0 %vm717_vm1, %v683_v52  ;;  %v1085_v52 = vmul.f32 %v1930_v30, %v1084_v41 }
 0x1b1   :  { %1736 = vmatmul.msk.bf16.gmra.mxu0 %vm717_vm1, %v684_v61 }
 0x1be   :  { %v751_v63 = vpop.f32.mrf.mxu0 }
 0x1bf   :  { %v794_v9 = vadd.f32 %v2454_v62, %v751_v63 }
 0x1c1   :  { %v810_v1 = vadd.f32 %v794_v9, %v2366_v21 }
 0x1c3   :  { %v826_v15 = vmax.f32 %v810_v1, 0.0 }
 0x1c5   :  { %v922_v2 = vmul.f32 %v1888_v7, %v826_v15  ;;  %v1010_v17 = vsel %vm717_vm1, %v826_v15, 0.0 }
 0x1c6   :  { %v753_v3 = vpop.f32.mrf.mxu0 }
 0x1c7   :  { %v795_v4 = vadd.f32 %v2454_v62, %v753_v3  ;;  %v938_v26 = vsel %vm717_vm1, %v922_v2, 0.0  ;;  %v1086_v3 = vadd.f32 %v1930_v30, %v1085_v52 }
 0x1c9   :  { %v811_v8 = vadd.f32 %v795_v4, %v2369_v22 }
 0x1cb   :  { %v827_v14 = vmax.f32 %v811_v8, 0.0  ;;  %v2480_v8 = vsel %vm1087_vm2, %v1930_v30, %v1086_v3 }
 0x1cd   :  { %v923_v18 = vmul.f32 %v1889_v10, %v827_v14  ;;  %v1011_v23 = vsel %vm717_vm1, %v827_v14, 0.0  ;;  %v1097_v24 = vpack.c.bf16 %v827_v14, %v826_v15 }
 0x1ce   :  { %v1012_v21 = vadd.f32 %v1011_v23, %v1010_v17  ;;  %v756_v25 = vpop.f32.mrf.mxu0  ;;  %v1897_v17 = vpop.permute.xlu1 %1896 }
 0x1cf   :  { %v939_v27 = vsel %vm717_vm1, %v923_v18, 0.0  ;;  %v796_v28 = vadd.f32 %v2454_v62, %v756_v25  ;;  %1753 = vmatmul.msk.bf16.vlgmr.msra.gmra.mxu1 %vm717_vm1, %v1097_v24  ;;  %v1898_v24 = vunpack.i.l.bf16 %v1897_v17 }
 0x1d0   :  { %v1013_v22 = vrot.slane %v1012_v21, 4  ;;  %v2466_v29 = vadd.f32 %v939_v27, %v938_v26  ;;  %v1899_v26 = vunpack.i.h.bf16 %v1897_v17 }
 0x1d1   :  { %v812_v31 = vadd.f32 %v796_v28, %v2383_v44 }
 0x1d2   :  { %v1014_v32 = vadd.f32 %v1013_v22, %v1012_v21 }
 0x1d3   :  { %v828_v38 = vmax.f32 %v812_v31, 0.0 }
 0x1d4   :  { %v1015_v40 = vrot.slane %v1014_v32, 2 }
 0x1d5   :  { %v924_v49 = vmul.f32 %v1893_v42, %v828_v38  ;;  %v1019_v53 = vsel %vm717_vm1, %v828_v38, 0.0 }
 0x1d6   :  { %v758_v35 = vpop.f32.mrf.mxu0  ;;  %v1016_v51 = vadd.f32 %v1015_v40, %v1014_v32 }
 0x1d7   :  { %v797_v39 = vadd.f32 %v2454_v62, %v758_v35  ;;  %v947_v60 = vsel %vm717_vm1, %v924_v49, 0.0 }
 0x1d9   :  { %v813_v45 = vadd.f32 %v797_v39, %v2380_v43  ;;  %v1017_v43 = vrot.slane %v1016_v51, 1 }
 0x1db   :  { %v829_v50 = vmax.f32 %v813_v45, 0.0  ;;  %v1018_v5 = vadd.f32 %v1017_v43, %v1016_v51 }
 0x1dd   :  { %v925_v44 = vmul.f32 %v1894_v48, %v829_v50  ;;  %v1020_v54 = vsel %vm717_vm1, %v829_v50, 0.0  ;;  %v1098_v57 = vpack.c.bf16 %v829_v50, %v828_v38  ;;  %v1089_v18 = vmul.f32 %v2480_v8, %v1018_v5 }
 0x1de   :  { %v1021_v58 = vadd.f32 %v1020_v54, %v1019_v53  ;;  %v761_v59 = vpop.f32.mrf.mxu0 }
 0x1df   :  { %v948_v61 = vsel %vm717_vm1, %v925_v44, 0.0  ;;  %v798_v63 = vadd.f32 %v2454_v62, %v761_v59  ;;  %1754 = vmatmul.msk.bf16.gmra.mxu1 %vm717_vm1, %v1098_v57  ;;  %v1210_v28 = vpack.c.bf16 %v1089_v18, %v1089_v18 }
 0x1e0   :  { %v1022_v9 = vrot.slane %v1021_v58, 4  ;;  %v2477_v1 = vadd.f32 %v948_v61, %v947_v60 }
 0x1e1   :  { %v814_v4 = vadd.f32 %v798_v63, %v2363_v20  ;;  %v1238_v41 = vunpack.c.l.b16 %v1210_v28 }
 0x1e2   :  { %v1023_v15 = vadd.f32 %v1022_v9, %v1021_v58  ;;  %v1902_v58 = vpop.permute.xlu2 %1901 }
 0x1e3   :  { %v830_v14 = vmax.f32 %v814_v4, 0.0  ;;  %v1903_v60 = vunpack.i.l.bf16 %v1902_v58  ;;  %v1904_v43 = vunpack.i.h.bf16 %v1902_v58 }
 0x1e4   :  { %v1024_v7 = vrot.slane %v1023_v15, 2 }
 0x1e5   :  { %v926_v27 = vmul.f32 %v1898_v24, %v830_v14  ;;  %v1028_v30 = vsel %vm717_vm1, %v830_v14, 0.0 }
 0x1e6   :  { %v1025_v10 = vadd.f32 %v1024_v7, %v1023_v15  ;;  %v763_v2 = vpop.f32.mrf.mxu0 }
 0x1e7   :  { %v799_v6 = vadd.f32 %v2454_v62, %v763_v2  ;;  %v956_v39 = vsel %vm717_vm1, %v926_v27, 0.0 }
 0x1e8   :  { %v1026_v23 = vrot.slane %v1025_v10, 1 }
 0x1e9   :  { %v815_v21 = vadd.f32 %v799_v6, %v2360_v19 }
 0x1ea   :  { %v1027_v25 = vadd.f32 %v1026_v23, %v1025_v10  ;;  %v1907_v23 = vpop.permute.xlu0 %1906 }
 0x1eb   :  { %v831_v20 = vmax.f32 %v815_v21, 0.0 }
 0x1ec   :  { %v1090_v22 = vmul.f32 %v2480_v8, %v1027_v25 }
 0x1ed   :  { %v927_v31 = vmul.f32 %v1899_v26, %v831_v20  ;;  %v1029_v32 = vsel %vm717_vm1, %v831_v20, 0.0  ;;  %v1099_v33 = vpack.c.bf16 %v831_v20, %v830_v14  ;;  %v1908_v26 = vunpack.i.l.bf16 %v1907_v23 }
 0x1ee   :  { %v1211_v34 = vpack.c.bf16 %v1090_v22, %v1090_v22  ;;  %v1030_v35 = vadd.f32 %v1029_v32, %v1028_v30  ;;  %v766_v38 = vpop.f32.mrf.mxu0  ;;  %v1909_v20 = vunpack.i.h.bf16 %v1907_v23 }
 0x1ef   :  { %v957_v19 = vsel %vm717_vm1, %v927_v31, 0.0  ;;  %v800_v40 = vadd.f32 %v2454_v62, %v766_v38  ;;  %1755 = vmatmul.msk.bf16.gmra.mxu1 %vm717_vm1, %v1099_v33 }
 0x1f0   :  { %v1239_v42 = vunpack.c.l.b16 %v1211_v34  ;;  %v1031_v45 = vrot.slane %v1030_v35, 4  ;;  %v2492_v48 = vadd.f32 %v957_v19, %v956_v39  ;;  %v1912_v39 = vpop.permute.xlu1 %1911 }
 0x1f1   :  { %v816_v51 = vadd.f32 %v800_v40, %v2389_v47 }
 0x1f2   :  { %v1247_v49 = vsel %vm1246_vm3, %v1239_v42, %v1238_v41  ;;  %v1032_v50 = vadd.f32 %v1031_v45, %v1030_v35  ;;  %v1913_v41 = vunpack.i.l.bf16 %v1912_v39  ;;  %v1914_v45 = vunpack.i.h.bf16 %v1912_v39 }
 0x1f3   :  { %v832_v54 = vmax.f32 %v816_v51, 0.0 }
 0x1f4   :  { %v1033_v52 = vrot.slane %v1032_v50, 2 }
 0x1f5   :  { %v928_v9 = vmul.f32 %v1903_v60, %v832_v54 }
 0x1f6   :  { %v1034_v53 = vadd.f32 %v1033_v52, %v1032_v50  ;;  %v768_v44 = vpop.f32.mrf.mxu0 }
 0x1f7   :  { %v801_v57 = vadd.f32 %v2454_v62, %v768_v44  ;;  %v965_v10 = vsel %vm717_vm1, %v928_v9, 0.0  ;;  %v1917_v9 = vpop.permute.xlu2 %1916 }
 0x1f8   :  { %v1035_v59 = vrot.slane %v1034_v53, 1 }
 0x1f9   :  { %v817_v61 = vadd.f32 %v801_v57, %v2386_v46 }
 0x1fa   :  { %v1036_v63 = vadd.f32 %v1035_v59, %v1034_v53 }
 0x1fb   :  { %v833_v3 = vmax.f32 %v817_v61, 0.0  ;;  %v1037_v61 = vsel %vm717_vm1, %v832_v54, 0.0 }
 0x1fc   :  { %v1091_v15 = vmul.f32 %v2480_v8, %v1036_v63 }
 0x1fd   :  { %v929_v4 = vmul.f32 %v1904_v43, %v833_v3  ;;  %v1100_v5 = vpack.c.bf16 %v833_v3, %v832_v54  ;;  %v1038_v59 = vsel %vm717_vm1, %v833_v3, 0.0  ;;  %v1821_v43 = vld [vmem:[#allocation11 + $0x18] sm:$0xff]  ;;  %v1820_v54 = vld [vmem:[#allocation11 + $0x10] sm:$0xff] }
 0x1fe   :  { %v1212_v47 = vpack.c.bf16 %v1091_v15, %v1091_v15  ;;  %v771_v7 = vpop.f32.mrf.mxu0  ;;  %v1039_v15 = vadd.f32 %v1038_v59, %v1037_v61  ;;  %1292 = vmatpush.bf16.msrb.mxu2 %v1821_v43 }
 0x1ff   :  { %v966_v2 = vsel %vm717_vm1, %v929_v4, 0.0  ;;  %v802_v14 = vadd.f32 %v2454_v62, %v771_v7  ;;  %1756 = vmatmul.msk.bf16.gmra.mxu1 %vm717_vm1, %v1100_v5 }
 0x200   :  { %v1240_v46 = vunpack.c.l.b16 %v1212_v47  ;;  %v2503_v6 = vadd.f32 %v966_v2, %v965_v10  ;;  %v1918_v2 = vunpack.i.l.bf16 %v1917_v9 }
 0x201   :  { %v818_v18 = vadd.f32 %v802_v14, %v2420_v37 }
 0x202   :  { %v2506_v17 = vsel %vm1248_vm4, %v1240_v46, %v1247_v49  ;;  %v1040_v46 = vrot.slane %v1039_v15, 4  ;;  %1293 = vmatpush.bf16.msrb.mxu2 %v1820_v54 }
 0x203   :  { %v834_v21 = vmax.f32 %v818_v18, 0.0  ;;  %v1919_v18 = vunpack.i.h.bf16 %v1917_v9 }
 0x205   :  { %v930_v28 = vmul.f32 %v1908_v26, %v834_v21  ;;  %v1046_v4 = vsel %vm717_vm1, %v834_v21, 0.0 }
 0x206   :  { %v773_v24 = vpop.f32.mrf.mxu0 }
 0x207   :  { %v803_v25 = vadd.f32 %v2454_v62, %v773_v24  ;;  %v974_v33 = vsel %vm717_vm1, %v930_v28, 0.0 }
 0x209   :  { %v819_v27 = vadd.f32 %v803_v25, %v2417_v36 }
 0x20b   :  { %v835_v22 = vmax.f32 %v819_v27, 0.0 }
 0x20d   :  { %v931_v30 = vmul.f32 %v1909_v20, %v835_v22  ;;  %v1101_v31 = vpack.c.bf16 %v835_v22, %v834_v21  ;;  %v1047_v60 = vsel %vm717_vm1, %v835_v22, 0.0  ;;  %v1819_v22 = vld [vmem:[#allocation11 + $0x8] sm:$0xff] }
 0x20e   :  { %v776_v32 = vpop.f32.mrf.mxu0  ;;  %v1048_v47 = vadd.f32 %v1047_v60, %v1046_v4  ;;  %1294 = vmatpush.bf16.msrb.mxu2 %v1819_v22 }
 0x20f   :  { %v975_v34 = vsel %vm717_vm1, %v931_v30, 0.0  ;;  %v804_v37 = vadd.f32 %v2454_v62, %v776_v32  ;;  %1757 = vmatmul.msk.bf16.gmra.mxu1 %vm717_vm1, %v1101_v31  ;;  %v1041_v30 = vadd.f32 %v1040_v46, %v1039_v15 }
 0x210   :  { %v2515_v35 = vadd.f32 %v975_v34, %v974_v33  ;;  %v1049_v23 = vrot.slane %v1048_v47, 4 }
 0x211   :  { %v820_v38 = vadd.f32 %v804_v37, %v2431_v56 }
 0x212   :  { %v1050_v33 = vadd.f32 %v1049_v23, %v1048_v47 }
 0x213   :  { %v836_v19 = vmax.f32 %v820_v38, 0.0  ;;  %v1818_v38 = vld [vmem:[#allocation11] sm:$0xff] }
 0x214   :  { %1295 = vmatpush.bf16.msrb.mxu2 %v1818_v38 }
 0x215   :  { %v932_v49 = vmul.f32 %v1913_v41, %v836_v19  ;;  %v1055_v7 = vsel %vm717_vm1, %v836_v19, 0.0 }
 0x216   :  { %v778_v36 = vpop.f32.mrf.mxu0 }
 0x217   :  { %v805_v40 = vadd.f32 %v2454_v62, %v778_v36  ;;  %v983_v44 = vsel %vm717_vm1, %v932_v49, 0.0 }
 0x219   :  { %v821_v42 = vadd.f32 %v805_v40, %v2428_v55  ;;  %v1042_v40 = vrot.slane %v1041_v30, 2 }
 0x21b   :  { %v837_v50 = vmax.f32 %v821_v42, 0.0  ;;  %v1051_v42 = vrot.slane %v1050_v33, 2 }
 0x21d   :  { %v933_v51 = vmul.f32 %v1914_v45, %v837_v50  ;;  %v1102_v52 = vpack.c.bf16 %v837_v50, %v836_v19  ;;  %v1056_v63 = vsel %vm717_vm1, %v837_v50, 0.0 }
 0x21e   :  { %v781_v53 = vpop.f32.mrf.mxu0 }
 0x21f   :  { %v984_v57 = vsel %vm717_vm1, %v933_v51, 0.0  ;;  %v806_v56 = vadd.f32 %v2454_v62, %v781_v53  ;;  %1758 = vmatmul.msk.bf16.gmra.mxu1 %vm717_vm1, %v1102_v52  ;;  %v1922_v51 = vpop.permute.xlu0 %1921  ;;  %v1043_v52 = vadd.f32 %v1042_v40, %v1041_v30 }
 0x220   :  { %v2524_v58 = vadd.f32 %v984_v57, %v983_v44  ;;  %v1052_v44 = vadd.f32 %v1051_v42, %v1050_v33  ;;  %v1924_v43 = vunpack.i.h.bf16 %v1922_v51 }
 0x221   :  { %v822_v55 = vadd.f32 %v806_v56, %v2407_v13  ;;  %v1057_v13 = vadd.f32 %v1056_v63, %v1055_v7  ;;  %v1044_v63 = vrot.slane %v1043_v52, 1 }
 0x222   :  { %v1053_v9 = vrot.slane %v1052_v44, 1 }
 0x223   :  { %v838_v10 = vmax.f32 %v822_v55, 0.0  ;;  %v1058_v21 = vrot.slane %v1057_v13, 4  ;;  %v1923_v55 = vunpack.i.l.bf16 %v1922_v51 }
 0x225   :  { %v934_v24 = vmul.f32 %v1918_v2, %v838_v10  ;;  %v1064_v26 = vsel %vm717_vm1, %v838_v10, 0.0  ;;  %v1059_v39 = vadd.f32 %v1058_v21, %v1057_v13  ;;  %v1045_v13 = vadd.f32 %v1044_v63, %v1043_v52 }
 0x226   :  { %v783_v5 = vpop.f32.mrf.mxu0  ;;  %v1054_v2 = vadd.f32 %v1053_v9, %v1052_v44  ;;  %v1824_v44 = vld [vmem:[#allocation13 + $0x10] sm:$0xff] }
 0x227   :  { %v807_v3 = vadd.f32 %v2454_v62, %v783_v5  ;;  %v1060_v49 = vrot.slane %v1059_v39, 2 }
 0x228   :  { %v1093_v21 = vmul.f32 %v2480_v8, %v1054_v2 }
 0x229   :  { %v823_v14 = vadd.f32 %v807_v3, %v2404_v12  ;;  %v992_v12 = vsel %vm717_vm1, %v934_v24, 0.0  ;;  %v1061_v59 = vadd.f32 %v1060_v49, %v1059_v39  ;;  %v1092_v24 = vmul.f32 %v2480_v8, %v1045_v13 }
 0x22a   :  { %v1214_v30 = vpack.c.bf16 %v1093_v21, %v1093_v21 }
 0x22b   :  { %v839_v25 = vmax.f32 %v823_v14, 0.0  ;;  %v1062_v4 = vrot.slane %v1061_v59, 1 }
 0x22d   :  { %v935_v27 = vmul.f32 %v1919_v18, %v839_v25  ;;  %v1065_v20 = vsel %vm717_vm1, %v839_v25, 0.0  ;;  %v1103_v28 = vpack.c.bf16 %v839_v25, %v838_v10  ;;  %v1063_v54 = vadd.f32 %v1062_v4, %v1061_v59 }
 0x22e   :  { %v1066_v31 = vadd.f32 %v1065_v20, %v1064_v26  ;;  %v786_v32 = vpop.f32.mrf.mxu0 }
 0x22f   :  { %v993_v34 = vsel %vm717_vm1, %v935_v27, 0.0  ;;  %v808_v37 = vadd.f32 %v2454_v62, %v786_v32  ;;  %1759 = vmatmul.msk.bf16.gmra.mxu1 %vm717_vm1, %v1103_v28  ;;  %v1094_v26 = vmul.f32 %v2480_v8, %v1063_v54  ;;  %v1213_v28 = vpack.c.bf16 %v1092_v24, %v1092_v24 }
 0x230   :  { %v1067_v36 = vrot.slane %v1066_v31, 4  ;;  %v2541_v19 = vadd.f32 %v993_v34, %v992_v12 }
 0x231   :  { %v824_v45 = vadd.f32 %v808_v37, %v2401_v11  ;;  %v1241_v12 = vunpack.c.l.b16 %v1213_v28  ;;  %v1242_v37 = vunpack.c.l.b16 %v1214_v30 }
 0x232   :  { %v1068_v41 = vadd.f32 %v1067_v36, %v1066_v31  ;;  %v1215_v31 = vpack.c.bf16 %v1094_v26, %v1094_v26 }
 0x233   :  { %v840_v57 = vmax.f32 %v824_v45, 0.0 }
 0x234   :  { %v1069_v50 = vrot.slane %v1068_v41, 2  ;;  %v1243_v38 = vunpack.c.l.b16 %v1215_v31 }
 0x235   :  { %v936_v15 = vmul.f32 %v1923_v55, %v840_v57  ;;  %v1073_v5 = vsel %vm717_vm1, %v840_v57, 0.0 }
 0x236   :  { %v788_v53 = vpop.f32.mrf.mxu0  ;;  %v1070_v60 = vadd.f32 %v1069_v50, %v1068_v41  ;;  %v1251_v41 = vsel %vm1250_vm5, %v1241_v12, %v2506_v17  ;;  %v1823_v17 = vld [vmem:[#allocation13 + $0x8] sm:$0xff] }
 0x237   :  { %v809_v56 = vadd.f32 %v2454_v62, %v788_v53  ;;  %v1001_v14 = vsel %vm717_vm1, %v936_v15, 0.0  ;;  %v1253_v42 = vsel %vm1252_vm6, %v1242_v37, %v1251_v41 }
 0x238   :  { %v1071_v47 = vrot.slane %v1070_v60, 1  ;;  %v1255_v49 = vsel %vm1254_vm7, %v1243_v38, %v1253_v42 }
 0x239   :  { %v825_v61 = vadd.f32 %v809_v56, %v2410_v16  ;;  %v1822_v56 = vld [vmem:[#allocation13] sm:$0xff] }
 0x23a   :  { %v1072_v23 = vadd.f32 %v1071_v47, %v1070_v60  ;;  %v1927_v60 = vld [vmem:[%s2666_s8] ss:$0 sm:$0xff] }
 0x23b   :  { %v841_v11 = vmax.f32 %v825_v61, 0.0 }
 0x23c   :  { %v1095_v20 = vmul.f32 %v2480_v8, %v1072_v23 }
 0x23d   :  { %v937_v7 = vmul.f32 %v1924_v43, %v841_v11  ;;  %v1074_v10 = vsel %vm717_vm1, %v841_v11, 0.0  ;;  %v1104_v3 = vpack.c.bf16 %v841_v11, %v840_v57 }
 0x23e   :  { %v1075_v62 = vadd.f32 %v1074_v10, %v1073_v5  ;;  %v1216_v33 = vpack.c.bf16 %v1095_v20, %v1095_v20 }
 0x23f   :  { %v1002_v16 = vsel %vm717_vm1, %v937_v7, 0.0  ;;  %1760 = vmatmul.msk.bf16.gmra.mxu1 %vm717_vm1, %v1104_v3 }
 0x240   :  { %v1076_v46 = vrot.slane %v1075_v62, 4  ;;  %v2551_v18 = vadd.f32 %v1002_v16, %v1001_v14  ;;  %v1244_v36 = vunpack.c.l.b16 %v1216_v33 }
 0x242   :  { %v1077_v25 = vadd.f32 %v1076_v46, %v1075_v62  ;;  %v1257_v50 = vsel %vm1256_vm8, %v1244_v36, %v1255_v49 }
 0x244   :  { %v1078_v27 = vrot.slane %v1077_v25, 2 }
 0x246   :  { %v1079_v22 = vadd.f32 %v1078_v27, %v1077_v25 }
 0x248   :  { %v1080_v32 = vrot.slane %v1079_v22, 1 }
 0x24a   :  { %v1081_v34 = vadd.f32 %v1080_v32, %v1079_v22 }
 0x24c   :  { %v1096_v39 = vmul.f32 %v2480_v8, %v1081_v34  ;;  %v1825_v8 = vld [vmem:[#allocation13 + $0x18] sm:$0xff]  ;;  %v1170_v53 = vpop.f32.mrf.mxu1 }
 0x24d   :  { %1425 = vmatpush.bf16.msrb.mxu3 %v1825_v8 }
 0x24e   :  { %v1217_v40 = vpack.c.bf16 %v1096_v39, %v1096_v39 }
 0x250   :  { %v1245_v45 = vunpack.c.l.b16 %v1217_v40 }
 0x251   :  { %1426 = vmatpush.bf16.msrb.mxu3 %v1824_v44 }
 0x252   :  { %v1259_v51 = vsel %vm1258_vm9, %v1245_v45, %v1257_v50 }
 0x253   :  { %v1260_v52 = vpack.c.b16 %v1259_v51, %v1259_v51 }
 0x254   :  { %v1172_v57 = vpop.f32.mrf.mxu1 }
 0x255   :  { %1777 = vmatmul.msk.bf16.vlgmr.msrb.gmra.mxu2 %vm717_vm1, %v1260_v52  ;;  %1427 = vmatpush.bf16.msrb.mxu3 %v1823_v17 }
 0x259   :  { %1428 = vmatpush.bf16.msrb.mxu3 %v1822_v56 }
 0x25c   :  { %v1175_v59 = vpop.f32.mrf.mxu1 }
 0x264   :  { %v1177_v55 = vpop.f32.mrf.mxu1 }
 0x26c   :  { %v1180_v43 = vpop.f32.mrf.mxu1 }
 0x274   :  { %v1182_v3 = vpop.f32.mrf.mxu1 }
 0x27c   :  { %v1185_v54 = vpop.f32.mrf.mxu1 }
 0x284   :  { %v1187_v25 = vpop.f32.mrf.mxu1 }
 0x28c   :  { %v1190_v30 = vpop.f32.mrf.mxu1 }
 0x294   :  { %v1192_v12 = vpop.f32.mrf.mxu1 }
 0x29c   :  { %v1195_v40 = vpop.f32.mrf.mxu1 }
 0x2a4   :  { %v1197_v50 = vpop.f32.mrf.mxu1 }
 0x2ac   :  { %v1200_v17 = vpop.f32.mrf.mxu1 }
 0x2d8   :  { %v1297_v61 = vpop.f32.mrf.mxu2 }
 0x2d9   :  { %v2568_v63 = vadd.f32 %v1927_v60, %v1297_v61  ;;  %v1202_v60 = vpop.f32.mrf.mxu1 }
 0x2db   :  { %v1309_v9 = vperm.slane %v2568_v63, 0  ;;  %v1302_v10 = vrot.slane %v2568_v63, 1  ;;  %v1303_v23 = vrot.slane %v2568_v63, 2  ;;  %v1304_v22 = vrot.slane %v2568_v63, 3 }
 0x2dc   :  { %v1305_v39 = vrot.slane %v2568_v63, 4  ;;  %v1306_v52 = vrot.slane %v2568_v63, 5 }
 0x2dd   :  { %v1325_v15 = vadd.f32 %v1309_v9, %v1170_v53  ;;  %v1326_v11 = vadd.f32 %v1309_v9, %v1172_v57  ;;  %v1310_v13 = vperm.slane %v1302_v10, 0  ;;  %v1311_v24 = vperm.slane %v1303_v23, 0 }
 0x2de   :  { %v1312_v31 = vperm.slane %v1304_v22, 0  ;;  %v1313_v36 = vperm.slane %v1305_v39, 0  ;;  %v1314_v8 = vperm.slane %v1306_v52, 0 }
 0x2df   :  { %v1341_v4 = vmax.f32 %v1325_v15, 0.0  ;;  %v1342_v5 = vmax.f32 %v1326_v11, 0.0  ;;  %v1327_v62 = vadd.f32 %v1310_v13, %v1175_v59  ;;  %v1328_v2 = vadd.f32 %v1310_v13, %v1177_v55 }
 0x2e0   :  { %v1299_v47 = vpop.f32.mrf.mxu2  ;;  %v1329_v21 = vadd.f32 %v1311_v24, %v1180_v43  ;;  %v1330_v26 = vadd.f32 %v1311_v24, %v1182_v3  ;;  %v1331_v32 = vadd.f32 %v1312_v31, %v1185_v54  ;;  %v1332_v33 = vadd.f32 %v1312_v31, %v1187_v25 }
 0x2e1   :  { %v1357_v7 = vpack.c.bf16 %v1342_v5, %v1341_v4  ;;  %v1343_v14 = vmax.f32 %v1327_v62, 0.0  ;;  %v1344_v16 = vmax.f32 %v1328_v2, 0.0  ;;  %v1333_v41 = vadd.f32 %v1313_v36, %v1190_v30  ;;  %v1205_v4 = vpop.f32.mrf.mxu1 }
 0x2e2   :  { %v1345_v27 = vmax.f32 %v1329_v21, 0.0  ;;  %v1346_v20 = vmax.f32 %v1330_v26, 0.0  ;;  %v1347_v34 = vmax.f32 %v1331_v32, 0.0  ;;  %v1348_v37 = vmax.f32 %v1332_v33, 0.0 }
 0x2e3   :  { %1794 = vmatmul.msk.bf16.vlgmr.msrb.gmra.mxu3 %vm717_vm1, %v1357_v7  ;;  %v1358_v46 = vpack.c.bf16 %v1344_v16, %v1343_v14  ;;  %v1334_v42 = vadd.f32 %v1313_v36, %v1192_v12  ;;  %v1349_v45 = vmax.f32 %v1333_v41, 0.0  ;;  %v1335_v53 = vadd.f32 %v1314_v8, %v1195_v40 }
 0x2e4   :  { %v1359_v28 = vpack.c.bf16 %v1346_v20, %v1345_v27  ;;  %v1360_v38 = vpack.c.bf16 %v1348_v37, %v1347_v34  ;;  %v1336_v44 = vadd.f32 %v1314_v8, %v1197_v50  ;;  %v1307_v55 = vrot.slane %v2568_v63, 6 }
 0x2e5   :  { %v1350_v49 = vmax.f32 %v1334_v42, 0.0  ;;  %v1351_v57 = vmax.f32 %v1335_v53, 0.0  ;;  %v1308_v47 = vrot.slane %v2568_v63, 7  ;;  %v941_v16 = vrot.slane %v2466_v29, 4  ;;  %v2591_v63 = vld [vmem:[%s2668_s10] ss:$0 sm:$0xff] }
 0x2e6   :  { %v1352_v56 = vmax.f32 %v1336_v44, 0.0  ;;  %v1315_v61 = vperm.slane %v1307_v55, 0  ;;  %v950_v25 = vrot.slane %v2477_v1, 4  ;;  %v959_v37 = vrot.slane %v2492_v48, 4  ;;  %s2150_s10 = smov [#allocation16]  }
 0x2e7   :  { %v1361_v51 = vpack.c.bf16 %v1350_v49, %v1349_v45  ;;  %v1316_v7 = vperm.slane %v1308_v47, 0  ;;  %v942_v54 = vadd.f32 %v941_v16, %v2466_v29  ;;  %v968_v53 = vrot.slane %v2503_v6, 4  ;;  %s1612_s6 = sshll.u32 %s2150_s10, 4  ;;  %s1613_s6 = int_to_ptr.vmem [resolvable:$true] %s1612_s6 }
 0x2e8   :  { %v1362_v59 = vpack.c.bf16 %v1352_v56, %v1351_v57  ;;  %v1337_v43 = vadd.f32 %v1315_v61, %v1200_v17  ;;  %v1338_v9 = vadd.f32 %v1315_v61, %v1202_v60  ;;  %v951_v20 = vadd.f32 %v950_v25, %v2477_v1 }
 0x2e9   :  { %v1207_v10 = vpop.f32.mrf.mxu1  ;;  %v1339_v3 = vadd.f32 %v1316_v7, %v1205_v4  ;;  %v960_v36 = vadd.f32 %v959_v37, %v2492_v48  ;;  %v969_v57 = vadd.f32 %v968_v53, %v2503_v6  ;;  %v977_v4 = vrot.slane %v2515_v35, 4 }
 0x2ea   :  { %v1353_v15 = vmax.f32 %v1337_v43, 0.0  ;;  %v1354_v11 = vmax.f32 %v1338_v9, 0.0  ;;  %v1340_v13 = vadd.f32 %v1316_v7, %v1207_v10  ;;  %v952_v29 = vrot.slane %v951_v20, 2 }
 0x2eb   :  { %v1355_v62 = vmax.f32 %v1339_v3, 0.0  ;;  %v961_v42 = vrot.slane %v960_v36, 2  ;;  %v970_v55 = vrot.slane %v969_v57, 2  ;;  %v978_v7 = vadd.f32 %v977_v4, %v2515_v35 }
 0x2ec   :  { %v1363_v5 = vpack.c.bf16 %v1354_v11, %v1353_v15  ;;  %v1356_v2 = vmax.f32 %v1340_v13, 0.0  ;;  %v953_v32 = vadd.f32 %v952_v29, %v951_v20 }
 0x2ed   :  { %v962_v50 = vadd.f32 %v961_v42, %v960_v36  ;;  %v971_v43 = vadd.f32 %v970_v55, %v969_v57  ;;  %v979_v13 = vrot.slane %v978_v7, 2 }
 0x2ee   :  { %v1364_v14 = vpack.c.bf16 %v1356_v2, %v1355_v62  ;;  %v954_v34 = vrot.slane %v953_v32, 1 }
 0x2ef   :  { %v963_v8 = vrot.slane %v962_v50, 1  ;;  %v972_v11 = vrot.slane %v971_v43, 1 }
 0x2f0   :  { %v955_v1 = vadd.f32 %v954_v34, %v953_v32 }
 0x2f1   :  { %v964_v48 = vadd.f32 %v963_v8, %v962_v50  ;;  %v973_v6 = vadd.f32 %v972_v11, %v971_v43  ;;  %v1004_v50 = vrot.slane %v2551_v18, 4 }
 0x2f3   :  { %1795 = vmatmul.msk.bf16.gmra.mxu3 %vm717_vm1, %v1358_v46  ;;  %v943_v46 = vrot.slane %v942_v54, 2  ;;  %v1005_v8 = vadd.f32 %v1004_v50, %v2551_v18 }
 0x2f5   :  { %v944_v23 = vadd.f32 %v943_v46, %v942_v54 }
 0x2f7   :  { %v945_v24 = vrot.slane %v944_v23, 1 }
 0x2f9   :  { %v946_v27 = vadd.f32 %v945_v24, %v944_v23  ;;  %v986_v23 = vrot.slane %v2524_v58, 4 }
 0x303   :  { %1796 = vmatmul.msk.bf16.gmra.mxu3 %vm717_vm1, %v1359_v28 }
 0x313   :  { %1797 = vmatmul.msk.bf16.gmra.mxu3 %vm717_vm1, %v1360_v38 }
 0x323   :  { %1798 = vmatmul.msk.bf16.gmra.mxu3 %vm717_vm1, %v1361_v51 }
 0x333   :  { %1799 = vmatmul.msk.bf16.gmra.mxu3 %vm717_vm1, %v1362_v59 }
 0x343   :  { %1800 = vmatmul.msk.bf16.gmra.mxu3 %vm717_vm1, %v1363_v5 }
 0x353   :  { %1801 = vmatmul.msk.bf16.gmra.mxu3 %vm717_vm1, %v1364_v14  ;;  %v980_v14 = vadd.f32 %v979_v13, %v978_v7 }
 0x355   :  { %v981_v46 = vrot.slane %v980_v14, 1 }
 0x357   :  { %v982_v35 = vadd.f32 %v981_v46, %v980_v14 }
 0x366   :  { %v1430_v21 = vpop.f32.mrf.mxu3 }
 0x367   :  { %v1474_v26 = vadd.f32 %v2591_v63, %v1430_v21  ;;  %v987_v21 = vadd.f32 %v986_v23, %v2524_v58  ;;  %v1571_v23 = vand.u32 127, %v146_v0 }
 0x369   :  { %v1490_v28 = vmul.f32 %v1474_v26, %v946_v27  ;;  %v988_v20 = vrot.slane %v987_v21, 2 }
 0x36b   :  { %v1506_v22 = vsel %vm717_vm1, %v1490_v28, 0.0  ;;  %v989_v29 = vadd.f32 %v988_v20, %v987_v21 }
 0x36c   :  { %1507 = vadd.xlane.f32.xlu1 %v1506_v22 }
 0x36d   :  { %v990_v32 = vrot.slane %v989_v29, 1 }
 0x36e   :  { %v1432_v30 = vpop.f32.mrf.mxu3 }
 0x36f   :  { %v1475_v31 = vadd.f32 %v2591_v63, %v1432_v30  ;;  %v991_v58 = vadd.f32 %v990_v32, %v989_v29 }
 0x371   :  { %v1491_v33 = vmul.f32 %v1475_v31, %v946_v27 }
 0x373   :  { %v1509_v12 = vsel %vm717_vm1, %v1491_v33, 0.0  ;;  %v995_v33 = vrot.slane %v2541_v19, 4 }
 0x374   :  { %1510 = vadd.xlane.f32.xlu2 %v1509_v12 }
 0x375   :  { %v996_v37 = vadd.f32 %v995_v33, %v2541_v19 }
 0x376   :  { %v1435_v38 = vpop.f32.mrf.mxu3 }
 0x377   :  { %v1476_v39 = vadd.f32 %v2591_v63, %v1435_v38 }
 0x379   :  { %v1492_v40 = vmul.f32 %v1476_v39, %v955_v1 }
 0x37b   :  { %v1512_v41 = vsel %vm717_vm1, %v1492_v40, 0.0 }
 0x37c   :  { %1513 = vadd.xlane.f32.xlu0 %v1512_v41 }
 0x37e   :  { %v1437_v45 = vpop.f32.mrf.mxu3 }
 0x37f   :  { %v1477_v49 = vadd.f32 %v2591_v63, %v1437_v45 }
 0x381   :  { %v1493_v51 = vmul.f32 %v1477_v49, %v955_v1  ;;  %v997_v1 = vrot.slane %v996_v37, 2 }
 0x383   :  { %v1515_v52 = vsel %vm717_vm1, %v1493_v51, 0.0  ;;  %v998_v41 = vadd.f32 %v997_v1, %v996_v37 }
 0x384   :  { %1516 = vadd.xlane.f32.xlu2 %v1515_v52 }
 0x385   :  { %v999_v49 = vrot.slane %v998_v41, 1 }
 0x386   :  { %v1440_v44 = vpop.f32.mrf.mxu3 }
 0x387   :  { %v1478_v17 = vadd.f32 %v2591_v63, %v1440_v44  ;;  %v1000_v19 = vadd.f32 %v999_v49, %v998_v41 }
 0x389   :  { %v1494_v56 = vmul.f32 %v1478_v17, %v964_v48  ;;  %v1006_v17 = vrot.slane %v1005_v8, 2 }
 0x38b   :  { %v1518_v59 = vsel %vm717_vm1, %v1494_v56, 0.0  ;;  %v1007_v56 = vadd.f32 %v1006_v17, %v1005_v8 }
 0x38c   :  { %1519 = vadd.xlane.f32.xlu1 %v1518_v59 }
 0x38e   :  { %v1442_v60 = vpop.f32.mrf.mxu3 }
 0x38f   :  { %v1479_v61 = vadd.f32 %v2591_v63, %v1442_v60  ;;  %v1008_v60 = vrot.slane %v1007_v56, 1 }
 0x391   :  { %v1495_v9 = vmul.f32 %v1479_v61, %v964_v48 }
 0x393   :  { %v1521_v15 = vsel %vm717_vm1, %v1495_v9, 0.0  ;;  %v1009_v9 = vadd.f32 %v1008_v60, %v1007_v56 }
 0x394   :  { %1522 = vadd.xlane.f32.xlu2 %v1521_v15 }
 0x396   :  { %v1445_v5 = vpop.f32.mrf.mxu3 }
 0x397   :  { %v1480_v47 = vadd.f32 %v2591_v63, %v1445_v5 }
 0x399   :  { %v1496_v10 = vmul.f32 %v1480_v47, %v973_v6 }
 0x39b   :  { %v1524_v3 = vsel %vm717_vm1, %v1496_v10, 0.0 }
 0x39c   :  { %1525 = vadd.xlane.f32.xlu0 %v1524_v3 }
 0x39e   :  { %v1447_v62 = vpop.f32.mrf.mxu3 }
 0x39f   :  { %v1481_v2 = vadd.f32 %v2591_v63, %v1447_v62 }
 0x3a1   :  { %v1497_v16 = vmul.f32 %v1481_v2, %v973_v6 }
 0x3a3   :  { %v1527_v54 = vsel %vm717_vm1, %v1497_v16, 0.0 }
 0x3a4   :  { %1528 = vadd.xlane.f32.xlu1 %v1527_v54 }
 0x3a6   :  { %v1450_v24 = vpop.f32.mrf.mxu3 }
 0x3a7   :  { %v1482_v25 = vadd.f32 %v2591_v63, %v1450_v24  ;;  %v1573_v24 = vadd.s32 4294967288, %v1571_v23 }
 0x3a9   :  { %v1498_v26 = vmul.f32 %v1482_v25, %v982_v35 }
 0x3ab   :  { %v1530_v27 = vsel %vm717_vm1, %v1498_v26, 0.0 }
 0x3ac   :  { %1531 = vadd.xlane.f32.xlu2 %v1530_v27 }
 0x3ae   :  { %v1452_v28 = vpop.f32.mrf.mxu3 }
 0x3af   :  { %v1483_v22 = vadd.f32 %v2591_v63, %v1452_v28 }
 0x3b1   :  { %v1499_v30 = vmul.f32 %v1483_v22, %v982_v35 }
 0x3b3   :  { %v1533_v31 = vsel %vm717_vm1, %v1499_v30, 0.0 }
 0x3b4   :  { %1534 = vadd.xlane.f32.xlu0 %v1533_v31 }
 0x3b6   :  { %v1455_v12 = vpop.f32.mrf.mxu3 }
 0x3b7   :  { %v1484_v34 = vadd.f32 %v2591_v63, %v1455_v12 }
 0x3b9   :  { %v1500_v38 = vmul.f32 %v1484_v34, %v991_v58 }
 0x3bb   :  { %v1536_v39 = vsel %vm717_vm1, %v1500_v38, 0.0 }
 0x3bc   :  { %1537 = vadd.xlane.f32.xlu1 %v1536_v39 }
 0x3be   :  { %v1457_v36 = vpop.f32.mrf.mxu3 }
 0x3bf   :  { %v1485_v40 = vadd.f32 %v2591_v63, %v1457_v36 }
 0x3c1   :  { %v1501_v42 = vmul.f32 %v1485_v40, %v991_v58 }
 0x3c3   :  { %v1539_v45 = vsel %vm717_vm1, %v1501_v42, 0.0 }
 0x3c4   :  { %1540 = vadd.xlane.f32.xlu2 %v1539_v45 }
 0x3c6   :  { %v1460_v51 = vpop.f32.mrf.mxu3 }
 0x3c7   :  { %v1486_v52 = vadd.f32 %v2591_v63, %v1460_v51 }
 0x3c9   :  { %v1502_v53 = vmul.f32 %v1486_v52, %v1000_v19 }
 0x3cb   :  { %v1542_v44 = vsel %vm717_vm1, %v1502_v53, 0.0 }
 0x3cc   :  { %1543 = vadd.xlane.f32.xlu0 %v1542_v44 }
 0x3ce   :  { %v1462_v48 = vpop.f32.mrf.mxu3 }
 0x3cf   :  { %v1487_v57 = vadd.f32 %v2591_v63, %v1462_v48 }
 0x3d1   :  { %v1503_v59 = vmul.f32 %v1487_v57, %v1000_v19 }
 0x3d3   :  { %v1545_v55 = vsel %vm717_vm1, %v1503_v59, 0.0 }
 0x3d4   :  { %1546 = vadd.xlane.f32.xlu1 %v1545_v55 }
 0x3d6   :  { %v1465_v61 = vpop.f32.mrf.mxu3 }
 0x3d7   :  { %v1488_v43 = vadd.f32 %v2591_v63, %v1465_v61 }
 0x3d9   :  { %v1504_v15 = vmul.f32 %v1488_v43, %v1009_v9 }
 0x3db   :  { %v1548_v18 = vsel %vm717_vm1, %v1504_v15, 0.0 }
 0x3dc   :  { %1549 = vadd.xlane.f32.xlu2 %v1548_v18 }
 0x3de   :  { %v1467_v11 = vpop.f32.mrf.mxu3 }
 0x3df   :  { %v1489_v4 = vadd.f32 %v2591_v63, %v1467_v11  ;;  %v1508_v7 = vpop.xlane.xlu1 %1507 }
 0x3e0   :  { %v1572_v30 = vperm.slane %v1508_v7, %v1571_v23 }
 0x3e1   :  { %v1505_v5 = vmul.f32 %v1489_v4, %v1009_v9 }
 0x3e3   :  { %v1551_v47 = vsel %vm717_vm1, %v1505_v5, 0.0 }
 0x3e4   :  { %1552 = vadd.xlane.f32.xlu0 %v1551_v47 }
 0x3e7   :  { %v1511_v6 = vpop.xlane.xlu2 %1510 }
 0x3e8   :  { %v1574_v26 = vperm.slane %v1511_v6, %v1573_v24 }
 0x3ea   :  { %v1576_v58 = vsel %vm1575_vm10, %v1574_v26, %v1572_v30 }
 0x3ef   :  { %v1514_v3 = vpop.xlane.xlu0 %1513 }
 0x3f0   :  { %v1577_v27 = vperm.slane %v1514_v3, %v1571_v23 }
 0x3f7   :  { %v1517_v10 = vpop.xlane.xlu2 %1516 }
 0x3f8   :  { %v1578_v63 = vperm.slane %v1517_v10, %v1573_v24 }
 0x3fa   :  { %v1579_v31 = vsel %vm1575_vm10, %v1578_v63, %v1577_v27 }
 0x3fb   :  { %v1598_v39 = vsel %vm1246_vm3, %v1579_v31, %v1576_v58 }
 0x3ff   :  { %v1520_v13 = vpop.xlane.xlu1 %1519 }
 0x400   :  { %v1580_v22 = vperm.slane %v1520_v13, %v1571_v23 }
 0x407   :  { %v1523_v62 = vpop.xlane.xlu2 %1522 }
 0x408   :  { %v1581_v35 = vperm.slane %v1523_v62, %v1573_v24 }
 0x40a   :  { %v1582_v12 = vsel %vm1575_vm10, %v1581_v35, %v1580_v22 }
 0x40b   :  { %v1599_v41 = vsel %vm1248_vm4, %v1582_v12, %v1598_v39 }
 0x40f   :  { %v1526_v2 = vpop.xlane.xlu0 %1525 }
 0x410   :  { %v1583_v32 = vperm.slane %v1526_v2, %v1571_v23 }
 0x417   :  { %v1529_v14 = vpop.xlane.xlu1 %1528 }
 0x418   :  { %v1584_v20 = vperm.slane %v1529_v14, %v1573_v24 }
 0x41a   :  { %v1585_v37 = vsel %vm1575_vm10, %v1584_v20, %v1583_v32 }
 0x41b   :  { %v1600_v45 = vsel %vm1250_vm5, %v1585_v37, %v1599_v41 }
 0x41f   :  { %v1532_v16 = vpop.xlane.xlu2 %1531 }
 0x420   :  { %v1586_v0 = vperm.slane %v1532_v16, %v1571_v23 }
 0x427   :  { %v1535_v54 = vpop.xlane.xlu0 %1534 }
 0x428   :  { %v1587_v29 = vperm.slane %v1535_v54, %v1573_v24 }
 0x42a   :  { %v1588_v1 = vsel %vm1575_vm10, %v1587_v29, %v1586_v0 }
 0x42b   :  { %v1601_v51 = vsel %vm1252_vm6, %v1588_v1, %v1600_v45 }
 0x42f   :  { %v1538_v46 = vpop.xlane.xlu1 %1537 }
 0x430   :  { %v1589_v38 = vperm.slane %v1538_v46, %v1571_v23 }
 0x437   :  { %v1541_v25 = vpop.xlane.xlu2 %1540 }
 0x438   :  { %v1590_v33 = vperm.slane %v1541_v25, %v1573_v24 }
 0x43a   :  { %v1591_v42 = vsel %vm1575_vm10, %v1590_v33, %v1589_v38 }
 0x43b   :  { %v1602_v8 = vsel %vm1254_vm7, %v1591_v42, %v1601_v51 }
 0x43f   :  { %v1544_v21 = vpop.xlane.xlu0 %1543 }
 0x440   :  { %v1592_v36 = vperm.slane %v1544_v21, %v1571_v23 }
 0x447   :  { %v1547_v28 = vpop.xlane.xlu1 %1546 }
 0x448   :  { %v1593_v34 = vperm.slane %v1547_v28, %v1573_v24 }
 0x44a   :  { %v1594_v49 = vsel %vm1575_vm10, %v1593_v34, %v1592_v36 }
 0x44b   :  { %v1603_v53 = vsel %vm1256_vm8, %v1594_v49, %v1602_v8 }
 0x44f   :  { %v1550_v40 = vpop.xlane.xlu2 %1549 }
 0x450   :  { %v1595_v52 = vperm.slane %v1550_v40, %v1571_v23 }
 0x457   :  { %v1553_v50 = vpop.xlane.xlu0 %1552 }
 0x458   :  { %v1596_v19 = vperm.slane %v1553_v50, %v1573_v24 }
 0x45a   :  { %v1597_v44 = vsel %vm1575_vm10, %v1596_v19, %v1595_v52 }
 0x45b   :  { %v1604_v17 = vsel %vm1258_vm9, %v1597_v44, %v1603_v53 }
 0x45c   :  { %1606 = vst.msk [vmem:[#allocation16] sm:$0xff] %vm463_vm0, %v1604_v17 }
 0x45d   :  { %1617 = dma.vmem_to_hbm [thread:$0]  %s1613_s6, 128, %s1615_s19, [#allocation7]  }
 0x45e   :  { %2133 = dma.done.wait [#allocation7], 128  }
 0x45f   :  { %2134 = vsyncadd [#allocation7], 4294967168 }
 0x460   :  { %1622 = vsyncpa [#allocation6], 1 }
 0x461   :  { %1623 = vsyncpa [#allocation9], 1 }
 0x462   :  { %1624 = vsyncpa [#allocation12], 1 }
 0x463   :  { %1625 = vsyncpa [#allocation15], 1 }
 0x464   :  { %1626 = vsyncpa [#allocation7], 1 }

</bundles_post_ra>
